<compile_context>
chip_gen: v5e
topology: v5e:2x2
jax: 0.10.0
libtpu: 0.0.40
codegen_flags: <defaults>
</compile_context>

<pallas_src>
import functools

import jax
import jax.numpy as jnp
import numpy as np
from jax.experimental import pallas as pl
from jax.experimental.pallas import tpu as pltpu

EPS = 1e-5


# ----------------------------- Pallas kernel --------------------------------

def inverted_residual_kernel(x_ref, w1_ref, w2_ref, w34_ref, vecs_ref, o_ref,
                             *, compute_dtype):
    """Channel-major block: x_ref (C, tn), weights (E,C)/(E,E)/(C,E), out (C, tn)."""
    cdt = compute_dtype
    C = x_ref.shape[0]

    x = x_ref[...]                                    # (C, tn) f32 (residual)
    vf = vecs_ref[...]                                # (E, 8)  f32 slab
    b1 = vf[:, 0:1].astype(cdt)                       # expand bias + BN
    a1 = vf[:, 1:2].astype(cdt)                       # DSC1 depthwise affine
    c1 = vf[:, 2:3].astype(cdt)
    b2 = vf[:, 3:4].astype(cdt)                       # DSC1 pointwise bias + BNs
    a2 = vf[:, 4:5].astype(cdt)                       # DSC2 depthwise affine
    c2 = vf[:, 5:6].astype(cdt)
    b34 = vf[:C, 6:7]                                 # folded DSC2-pw + project bias (f32)

    # expand: Conv1d(C->E, k=1) + BN + ReLU      (bf16 MXU, f32 accumulate)
    h = jnp.dot(w1_ref[...], x.astype(w1_ref.dtype),
                preferred_element_type=jnp.float32).astype(cdt)
    h = jnp.maximum(h + b1, 0)                        # (E, tn)

    # DSC1: depthwise(k=1) + BN + ReLU, then pointwise + BN + outer BN (folded)
    h = jnp.maximum(h * a1 + c1, 0)
    h = jnp.dot(w2_ref[...], h.astype(w2_ref.dtype),
                preferred_element_type=jnp.float32).astype(cdt) + b2

    # DSC2: depthwise(k=1) + BN + ReLU, then (pointwise + BNs + project + BN)
    # folded into a single (C, E) matmul.
    h = jnp.maximum(h * a2 + c2, 0)
    z = jnp.dot(w34_ref[...], h.astype(w34_ref.dtype),
                preferred_element_type=jnp.float32)   # (C, tn) f32

    # residual add (identity shortcut) + ReLU, all f32; lane-dense store
    o_ref[...] = jnp.maximum(z + b34 + x.astype(jnp.float32), 0.0).astype(o_ref.dtype)


def _default_compute_dtype():
    """bf16 elementwise chain on v6e/v7x (bf16 VPU); f32 on v5e and older."""
    try:
        kind = jax.devices()[0].device_kind.lower()
    except Exception:
        return jnp.float32
    if any(v in kind for v in ("v2", "v3", "v4", "v5")):
        return jnp.float32
    return jnp.bfloat16


def inverted_residual_block(x, params, *, tn=512, compute_dtype=None):
    """x: (N, C) float32.  params: dict of folded channel-major weights/biases (f32).

    tn: points-per-tile (lane axis); multiple of 128.  Sweep {256, 512, 1024}
    for realistic N; keep the grid even with >= 4 steps for v7x megacore.
    """
    N, C = x.shape
    E = params["w1"].shape[0]
    if compute_dtype is None:
        compute_dtype = _default_compute_dtype()

    n_tiles = pl.cdiv(N, tn)
    N_pad = n_tiles * tn

    # channel-major: one transpose in the wrapper, points on the lane axis
    x_cm = x.T                                          # (C, N)
    if N_pad != N:
        x_cm = jnp.pad(x_cm, ((0, 0), (0, N_pad - N)))

    # bf16 weights for the MXU (accumulation stays f32 inside the kernel)
    w1 = params["w1"].astype(jnp.bfloat16)              # (E, C)
    w2 = params["w2"].astype(jnp.bfloat16)              # (E, E)
    w34 = params["w34"].astype(jnp.bfloat16)            # (C, E)

    # pack per-channel vectors into one (E, 8) slab -> single DMA stream,
    # column slices broadcast along lanes inside the kernel
    b34_pad = jnp.zeros((E,), jnp.float32).at[:C].set(params["b34"])
    vecs = jnp.stack([params["b1"], params["a1"], params["c1"],
                      params["b2"], params["a2"], params["c2"],
                      b34_pad, jnp.zeros((E,), jnp.float32)], axis=1)   # (E, 8)

    col = lambda i: (0, i)     # x / out tiles march along the point (lane) axis
    rep = lambda i: (0, 0)     # weights / vecs resident across the grid

    kernel = functools.partial(inverted_residual_kernel,
                               compute_dtype=compute_dtype)

    out_cm = pl.pallas_call(
        kernel,
        out_shape=jax.ShapeDtypeStruct((C, N_pad), x.dtype),
        grid_spec=pltpu.PrefetchScalarGridSpec(
            num_scalar_prefetch=0,
            grid=(n_tiles,),
            in_specs=[
                pl.BlockSpec((C, tn), col),     # x (channel-major, lane-dense)
                pl.BlockSpec((E, C), rep),      # w1
                pl.BlockSpec((E, E), rep),      # w2
                pl.BlockSpec((C, E), rep),      # w34 (folded)
                pl.BlockSpec((E, 8), rep),      # packed bias/affine vectors
            ],
            out_specs=pl.BlockSpec((C, tn), col),
        ),
        compiler_params=pltpu.CompilerParams(
            dimension_semantics=("parallel",)),
    )(x_cm, w1, w2, w34, vecs)

    out_cm = out_cm[:, :N] if N_pad != N else out_cm
    return out_cm.T                                      # back to (N, C)


# --------------------------- parameter construction --------------------------

def bn_scale_shift(key, ch):
    """Eval-mode BatchNorm1d -> per-channel (scale, shift)."""
    k1, k2, k3, k4 = jax.random.split(key, 4)
    gamma = 1.0 + 0.1 * jax.random.normal(k1, (ch,), jnp.float32)
    beta = 0.1 * jax.random.normal(k2, (ch,), jnp.float32)
    mean = 0.1 * jax.random.normal(k3, (ch,), jnp.float32)
    var = jax.nn.softplus(jax.random.normal(k4, (ch,), jnp.float32)) + 0.5
    s = gamma / jnp.sqrt(var + EPS)
    t = beta - mean * s
    return s, t


def make_params(key, C, expansion=4):
    """Deterministic synthetic parameters with PyTorch-equivalent folding."""
    E = C * expansion
    ks = jax.random.split(key, 20)
    init = lambda k, shape: 0.1 * jax.random.normal(k, shape, jnp.float32)

    # raw (un-folded) parameters, mirroring the torch module
    we, be = init(ks[0], (E, C)), init(ks[1], (E,))            # expand conv
    s_e, t_e = bn_scale_shift(ks[2], E)                        # expand BN

    dw1_w, dw1_b = init(ks[3], (E,)), init(ks[4], (E,))        # DSC1 depthwise k=1
    s_d1, t_d1 = bn_scale_shift(ks[5], E)                      # DSC1 depthwise BN
    wp1, bp1 = init(ks[6], (E, E)), init(ks[7], (E,))          # DSC1 pointwise
    s_p1, t_p1 = bn_scale_shift(ks[8], E)                      # DSC1 pointwise BN
    s_c1, t_c1 = bn_scale_shift(ks[9], E)                      # conv-seq BN #1

    dw2_w, dw2_b = init(ks[10], (E,)), init(ks[11], (E,))      # DSC2 depthwise k=1
    s_d2, t_d2 = bn_scale_shift(ks[12], E)                     # DSC2 depthwise BN
    wp2, bp2 = init(ks[13], (E, E)), init(ks[14], (E,))        # DSC2 pointwise
    s_p2, t_p2 = bn_scale_shift(ks[15], E)                     # DSC2 pointwise BN
    s_c2, t_c2 = bn_scale_shift(ks[16], E)                     # conv-seq BN #2

    wpr, bpr = init(ks[17], (C, E)), init(ks[18], (C,))        # project conv
    s_pr, t_pr = bn_scale_shift(ks[19], C)                     # project BN

    # fold BN affines into adjacent 1x1 convs, CHANNEL-MAJOR (out_ch on rows)
    w1 = we * s_e[:, None]                    # (E, C)
    b1 = be * s_e + t_e
    a1 = dw1_w * s_d1
    c1 = dw1_b * s_d1 + t_d1
    w2 = wp1 * (s_p1 * s_c1)[:, None]         # (E, E)
    b2 = (bp1 * s_p1 + t_p1) * s_c1 + t_c1
    a2 = dw2_w * s_d2
    c2 = dw2_b * s_d2 + t_d2
    w3 = wp2 * (s_p2 * s_c2)[:, None]         # (E, E)
    b3 = (bp2 * s_p2 + t_p2) * s_c2 + t_c2
    w4 = wpr * s_pr[:, None]                  # (C, E)
    b4 = bpr * s_pr + t_pr

    # fold DSC2-pointwise into project (no ReLU in between -> exact)
    w34 = w4 @ w3                             # (C, E)
    b34 = w4 @ b3 + b4                        # (C,)

    params = {"w1": w1, "b1": b1, "a1": a1, "c1": c1,
              "w2": w2, "b2": b2, "a2": a2, "c2": c2,
              "w34": w34, "b34": b34}

    # keep raw params for the un-folded reference check
    raw = dict(we=we, be=be, s_e=s_e, t_e=t_e,
               dw1_w=dw1_w, dw1_b=dw1_b, s_d1=s_d1, t_d1=t_d1,
               wp1=wp1, bp1=bp1, s_p1=s_p1, t_p1=t_p1, s_c1=s_c1, t_c1=t_c1,
               dw2_w=dw2_w, dw2_b=dw2_b, s_d2=s_d2, t_d2=t_d2,
               wp2=wp2, bp2=bp2, s_p2=s_p2, t_p2=t_p2, s_c2=s_c2, t_c2=t_c2,
               wpr=wpr, bpr=bpr, s_pr=s_pr, t_pr=t_pr)
    return params, raw


def reference_forward(x, r):
    """Pure-JAX, un-folded replica of the PyTorch forward (eval-mode BN), row-major."""
    relu = lambda v: jnp.maximum(v, 0.0)
    # expand
    h = x @ r["we"].T + r["be"]
    h = relu(h * r["s_e"] + r["t_e"])
    # DSC1
    h = relu((h * r["dw1_w"] + r["dw1_b"]) * r["s_d1"] + r["t_d1"])
    h = (h @ r["wp1"].T + r["bp1"]) * r["s_p1"] + r["t_p1"]
    h = h * r["s_c1"] + r["t_c1"]
    # DSC2
    h = relu((h * r["dw2_w"] + r["dw2_b"]) * r["s_d2"] + r["t_d2"])
    h = (h @ r["wp2"].T + r["bp2"]) * r["s_p2"] + r["t_p2"]
    h = h * r["s_c2"] + r["t_c2"]
    # project
    z = (h @ r["wpr"].T + r["bpr"]) * r["s_pr"] + r["t_pr"]
    # identity shortcut (in_channels == out_channels) + ReLU
    return relu(z + x)


# ---------------------------------- main -------------------------------------

if __name__ == "__main__":
    # in_channels == out_channels so the shortcut is the identity Sequential().
    # TODO(synk): the reference's in!=out shortcut applies Conv1d to a 2-D (N, C)
    # tensor (unbatched Conv1d), which only type-checks when N == in_channels;
    # that ill-posed branch is not reproduced here.
    N, C, EXPANSION = 1000, 32, 4     # E = 128; pad to 1024 -> 4 grid steps at tn=256

    key = jax.random.PRNGKey(0)
    kx, kp = jax.random.split(key)
    x = jax.random.normal(kx, (N, C), jnp.float32)
    params, raw = make_params(kp, C, EXPANSION)

    out = inverted_residual_block(x, params, tn=256)
    out = jax.block_until_ready(out)

    ref = reference_forward(x, raw)
    # bf16 MXU operands (+ bf16 affine chain on v6e/v7x) with f32 accumulation
    np.testing.assert_allclose(np.asarray(out), np.asarray(ref), rtol=5e-2, atol=5e-2)

    print("KERNEL_OK")
</pallas_src>

<mosaic_0001>
module attributes {stable_mosaic.version = 11 : i64} {
  func.func @inverted_residual_kernel(%arg0: i32, %arg1: memref<32x256xf32, #tpu.memory_space<vmem>>, %arg2: memref<128x32xbf16, #tpu.memory_space<vmem>>, %arg3: memref<128x128xbf16, #tpu.memory_space<vmem>>, %arg4: memref<32x128xbf16, #tpu.memory_space<vmem>>, %arg5: memref<128x8xf32, #tpu.memory_space<vmem>>, %arg6: memref<32x256xf32, #tpu.memory_space<vmem>>) attributes {dimension_semantics = [#tpu.dimension_semantics<parallel>], iteration_bounds = array<i64: 4>, scalar_prefetch = 0 : i64, scratch_operands = 0 : i64, tpu.core_type = #tpu.core_type<tc>, window_params = [{transform_indices = @transform_0, window_bounds = array<i64: 32, 256>}, {pipeline_mode = #tpu.pipeline_mode<synchronous>, transform_indices = @transform_1, window_bounds = array<i64: 128, 32>}, {pipeline_mode = #tpu.pipeline_mode<synchronous>, transform_indices = @transform_2, window_bounds = array<i64: 128, 128>}, {pipeline_mode = #tpu.pipeline_mode<synchronous>, transform_indices = @transform_3, window_bounds = array<i64: 32, 128>}, {pipeline_mode = #tpu.pipeline_mode<synchronous>, transform_indices = @transform_4, window_bounds = array<i64: 128, 8>}, {transform_indices = @transform_5, window_bounds = array<i64: 32, 256>}]} {
    %c0 = arith.constant 0 : index
    %c0_0 = arith.constant 0 : index
    %0 = vector.load %arg1[%c0, %c0_0] : memref<32x256xf32, #tpu.memory_space<vmem>>, vector<32x256xf32>
    %c0_1 = arith.constant 0 : index
    %c0_2 = arith.constant 0 : index
    %1 = vector.load %arg5[%c0_1, %c0_2] : memref<128x8xf32, #tpu.memory_space<vmem>>, vector<128x8xf32>
    %2 = vector.extract_strided_slice %1 {offsets = [0, 0], sizes = [128, 1], strides = [1, 1]} : vector<128x8xf32> to vector<128x1xf32>
    %3 = arith.truncf %2 : vector<128x1xf32> to vector<128x1xbf16>
    %4 = vector.extract_strided_slice %1 {offsets = [0, 1], sizes = [128, 1], strides = [1, 1]} : vector<128x8xf32> to vector<128x1xf32>
    %5 = arith.truncf %4 : vector<128x1xf32> to vector<128x1xbf16>
    %6 = vector.extract_strided_slice %1 {offsets = [0, 2], sizes = [128, 1], strides = [1, 1]} : vector<128x8xf32> to vector<128x1xf32>
    %7 = arith.truncf %6 : vector<128x1xf32> to vector<128x1xbf16>
    %8 = vector.extract_strided_slice %1 {offsets = [0, 3], sizes = [128, 1], strides = [1, 1]} : vector<128x8xf32> to vector<128x1xf32>
    %9 = arith.truncf %8 : vector<128x1xf32> to vector<128x1xbf16>
    %10 = vector.extract_strided_slice %1 {offsets = [0, 4], sizes = [128, 1], strides = [1, 1]} : vector<128x8xf32> to vector<128x1xf32>
    %11 = arith.truncf %10 : vector<128x1xf32> to vector<128x1xbf16>
    %12 = vector.extract_strided_slice %1 {offsets = [0, 5], sizes = [128, 1], strides = [1, 1]} : vector<128x8xf32> to vector<128x1xf32>
    %13 = arith.truncf %12 : vector<128x1xf32> to vector<128x1xbf16>
    %14 = vector.extract_strided_slice %1 {offsets = [0, 6], sizes = [32, 1], strides = [1, 1]} : vector<128x8xf32> to vector<32x1xf32>
    %c0_3 = arith.constant 0 : index
    %c0_4 = arith.constant 0 : index
    %15 = vector.load %arg2[%c0_3, %c0_4] : memref<128x32xbf16, #tpu.memory_space<vmem>>, vector<128x32xbf16>
    %16 = arith.truncf %0 : vector<32x256xf32> to vector<32x256xbf16>
    %cst = arith.constant dense<0.000000e+00> : vector<128x256xf32>
    %17 = tpu.matmul %15, %16, %cst {dimension_numbers = #tpu.dot_dimension_numbers<[1], [0], [0], [1], [0, 0, 1, 1], [], []>} : vector<128x32xbf16>, vector<32x256xbf16>, vector<128x256xf32> -> vector<128x256xf32>
    %18 = arith.truncf %17 : vector<128x256xf32> to vector<128x256xbf16>
    %19 = vector.broadcast %3 : vector<128x1xbf16> to vector<128x256xbf16>
    %20 = arith.addf %18, %19 : vector<128x256xbf16>
    %cst_5 = arith.constant 0.000000e+00 : bf16
    %21 = vector.broadcast %cst_5 : bf16 to vector<128x256xbf16>
    %22 = arith.maximumf %20, %21 : vector<128x256xbf16>
    %23 = vector.broadcast %5 : vector<128x1xbf16> to vector<128x256xbf16>
    %24 = arith.mulf %22, %23 : vector<128x256xbf16>
    %25 = vector.broadcast %7 : vector<128x1xbf16> to vector<128x256xbf16>
    %26 = arith.addf %24, %25 : vector<128x256xbf16>
    %cst_6 = arith.constant 0.000000e+00 : bf16
    %27 = vector.broadcast %cst_6 : bf16 to vector<128x256xbf16>
    %28 = arith.maximumf %26, %27 : vector<128x256xbf16>
    %c0_7 = arith.constant 0 : index
    %c0_8 = arith.constant 0 : index
    %29 = vector.load %arg3[%c0_7, %c0_8] : memref<128x128xbf16, #tpu.memory_space<vmem>>, vector<128x128xbf16>
    %cst_9 = arith.constant dense<0.000000e+00> : vector<128x256xf32>
    %30 = tpu.matmul %29, %28, %cst_9 {dimension_numbers = #tpu.dot_dimension_numbers<[1], [0], [0], [1], [0, 0, 1, 1], [], []>} : vector<128x128xbf16>, vector<128x256xbf16>, vector<128x256xf32> -> vector<128x256xf32>
    %31 = arith.truncf %30 : vector<128x256xf32> to vector<128x256xbf16>
    %32 = vector.broadcast %9 : vector<128x1xbf16> to vector<128x256xbf16>
    %33 = arith.addf %31, %32 : vector<128x256xbf16>
    %34 = vector.broadcast %11 : vector<128x1xbf16> to vector<128x256xbf16>
    %35 = arith.mulf %33, %34 : vector<128x256xbf16>
    %36 = vector.broadcast %13 : vector<128x1xbf16> to vector<128x256xbf16>
    %37 = arith.addf %35, %36 : vector<128x256xbf16>
    %cst_10 = arith.constant 0.000000e+00 : bf16
    %38 = vector.broadcast %cst_10 : bf16 to vector<128x256xbf16>
    %39 = arith.maximumf %37, %38 : vector<128x256xbf16>
    %c0_11 = arith.constant 0 : index
    %c0_12 = arith.constant 0 : index
    %40 = vector.load %arg4[%c0_11, %c0_12] : memref<32x128xbf16, #tpu.memory_space<vmem>>, vector<32x128xbf16>
    %cst_13 = arith.constant dense<0.000000e+00> : vector<32x256xf32>
    %41 = tpu.matmul %40, %39, %cst_13 {dimension_numbers = #tpu.dot_dimension_numbers<[1], [0], [0], [1], [0, 0, 1, 1], [], []>} : vector<32x128xbf16>, vector<128x256xbf16>, vector<32x256xf32> -> vector<32x256xf32>
    %42 = vector.broadcast %14 : vector<32x1xf32> to vector<32x256xf32>
    %43 = arith.addf %41, %42 : vector<32x256xf32>
    %44 = arith.addf %43, %0 : vector<32x256xf32>
    %cst_14 = arith.constant 0.000000e+00 : f32
    %45 = vector.broadcast %cst_14 : f32 to vector<32x256xf32>
    %46 = arith.maximumf %44, %45 : vector<32x256xf32>
    %c0_15 = arith.constant 0 : index
    %c0_16 = arith.constant 0 : index
    %47 = vector.load %arg6[%c0_15, %c0_16] : memref<32x256xf32, #tpu.memory_space<vmem>>, vector<32x256xf32>
    tpu.vector_store %arg6[%c0_15, %c0_16], %46 {strides = array<i32>} : memref<32x256xf32, #tpu.memory_space<vmem>>, vector<32x256xf32>,
    return
  }
  func.func @transform_0(%arg0: i32) -> (i32, i32) {
    %c0_i32 = arith.constant 0 : i32
    %c0_i32_0 = arith.constant 0 : i32
    return %c0_i32, %arg0 : i32, i32
  }
  func.func @transform_1(%arg0: i32) -> (i32, i32) {
    %c0_i32 = arith.constant 0 : i32
    %c0_i32_0 = arith.constant 0 : i32
    %c0_i32_1 = arith.constant 0 : i32
    return %c0_i32, %c0_i32_0 : i32, i32
  }
  func.func @transform_2(%arg0: i32) -> (i32, i32) {
    %c0_i32 = arith.constant 0 : i32
    %c0_i32_0 = arith.constant 0 : i32
    %c0_i32_1 = arith.constant 0 : i32
    return %c0_i32, %c0_i32_0 : i32, i32
  }
  func.func @transform_3(%arg0: i32) -> (i32, i32) {
    %c0_i32 = arith.constant 0 : i32
    %c0_i32_0 = arith.constant 0 : i32
    %c0_i32_1 = arith.constant 0 : i32
    return %c0_i32, %c0_i32_0 : i32, i32
  }
  func.func @transform_4(%arg0: i32) -> (i32, i32) {
    %c0_i32 = arith.constant 0 : i32
    %c0_i32_0 = arith.constant 0 : i32
    %c0_i32_1 = arith.constant 0 : i32
    return %c0_i32, %c0_i32_0 : i32, i32
  }
  func.func @transform_5(%arg0: i32) -> (i32, i32) {
    %c0_i32 = arith.constant 0 : i32
    %c0_i32_0 = arith.constant 0 : i32
    return %c0_i32, %arg0 : i32, i32
  }
}

</mosaic_0001>

<bundles_post_ra>
// kernel: tpu_custom_call.1
= control target key start
LH: loop header
LB: loop body
LE: loop exit
PB: predicated region body
PF: predicated region fallthrough
CT: control target
= control target key end

     0   :  { %10 = vsyncpa [#allocation3], 0  ;;  %s3869_s0 = inlined_call_operand.hbm [shape: f32[32,1024], index: 0, kind: input, shape index: {}]   ;;  %s3870_s1 = inlined_call_operand.vmem [shape: bf16[128,32], index: 1, kind: input, shape index: {}]   ;;  %s3871_s2 = inlined_call_operand.vmem [shape: bf16[128,128], index: 2, kind: input, shape index: {}]   ;;  %s3872_s3 = inlined_call_operand.vmem [shape: bf16[32,128], index: 3, kind: input, shape index: {}]   ;;  %s3873_s4 = inlined_call_operand.vmem [shape: f32[128,8], index: 4, kind: input, shape index: {}]   ;;  %s3874_s5 = inlined_call_operand.hbm [shape: f32[32,1024], index: 5, kind: output, shape index: {}]  }
   0x1   :  { %12 = vsyncpa [#allocation3 + $0x1], 0 }
   0x2   :  { %13 = vsyncpa [#allocation4], 0 }
   0x3   :  { %15 = vsyncpa [#allocation4 + $0x1], 0  ;;  %s2836_s18 = smov 0   ;;  %s2838_s19 = smov 0  }
   0x4   :  { %s2840_s20 = smov 0   ;;  %s2842_s21 = smov 0  }
   0x5 LB: > { %s2857_s22 = sadd.s32 4294967295, %s2790_s21   ;;  %s2452_s23 = sadd.s32 4294967294, %s2790_s21   ;;  %s2790_s21 = sphi %s2842_s21, %s3959_s21   ;;  %s2786_s20 = sphi %s2840_s20, %s3958_s20   ;;  %s2782_s19 = sphi %s2838_s19, %s3957_s19   ;;  %s2778_s18 = sphi %s2836_s18, %s3956_s18  }
   0x6   : > { %s2861_s24 = sadd.s32 1, %s2790_s21   ;;  %s28_s25 = sadd.s32 1, %s2786_s20 }
   0x7   : > { %s25_s26 = ssub.s32 %s2790_s21, %s2861_s24  ;;  %p35_p0 = scmp.ne.s32.totalorder %s2786_s20, %s2782_s19 }
   0x8   : > { %p26_p1 = scmp.eq.s32.totalorder %s25_s26, 0  ;;  %p36_p2 = scmp.eq.s32.totalorder %s2790_s21, 0 }
   0x9   : > { %p41_p3 = scmp.ne.s32.totalorder %s2782_s19, %s2778_s18  ;;  %p42_p4 = scmp.eq.s32.totalorder %s2857_s22, 0 }
   0xa   : > { %s2873_s27 = scalar_select %p26_p1, %s2786_s20, %s28_s25  }
   0xb   : > { %p2875_p5 = por %p36_p2, %p35_p0  ;;  %p2879_p6 = por %p42_p4, %p41_p3 }
   0xc   : > { %p149_p7 = scmp.eq.s32.totalorder %s2857_s22, 3  ;;  %p155_p8 = scmp.eq.s32.totalorder %s2452_s23, 3 }
   0xd   : > { %p2586_p9 = scmp.lt.s32.totalorder %s2790_s21, 4  ;;  %s187_s7 = sand.u32 1, %s2786_s20  }
   0xe   : > { %p2885_p10 = por %p149_p7, %p35_p0  ;;  %p2889_p11 = por %p155_p8, %p41_p3 }
   0xf   : > { %s2554_s8 = sshll.u32 %s2790_s21, 4  ;;  %s2455_s9 = sshll.u32 %s187_s7, 6 }
  0x10   : > { %s196_s12 = scalar_lea.hbm %s3869_s0, %s2554_s8  ;;  %s191_s14 = scalar_lea.vmem [#allocation2], %s2455_s9 }
  0x11   : > { %s197_s13 = sshll.u32 %s196_s12, 4  ;;  %s199_s15 = sshll.u32 %s191_s14, 4  ;;  %s198_s13 = int_to_ptr.hbm [resolvable:$true] %s197_s13  ;;  %s200_s15 = int_to_ptr.vmem [resolvable:$true] %s199_s15 }
  0x12   : > { %p2900_p12 = pnand %p2586_p9, %p2875_p5  ;;  %p2458_p13 = scmp.ge.s32.totalorder %s2790_s21, 1 }
  0x13   : > { %s188_s17 = scalar_lea.sflag [#allocation3], %s187_s7  ;;  %s2694_s23 = sshra.s32 %s198_s13, 4  ;;  %s2695_s23 = int_to_ptr.hbm [resolvable:$true] %s2694_s23 }
  0x14   : > { %s2696_s25 = scalar_lea.hbm %s2695_s23, 64  ;;  %p2698_p1 = pneg %p2900_p12 }
  0x15   : > { %p2697_p0 = scmp.ne.s32.totalorder %s2695_s23, %s2696_s25  ;;  %s2701_s9 = scalar_lea.hbm %s3869_s0, 256 }
  0x16   : > { %p2702_p4 = scmp.lt.s32.totalorder %s2695_s23, %s3869_s0  ;;  %p2703_p5 = scmp.lt.s32.totalorder %s2701_s9, %s2696_s25 }
  0x17   : > { %p2699_p2 = pnand %p2698_p1, %p2697_p0 }
  0x18   : > { %p2704_p7 = por %p2703_p5, %p2702_p4 }
  0x19   : > { %p2700_p3 = pneg %p2699_p2 }
  0x1b   : > { %p2705_p8 = pnand %p2704_p7, %p2700_p3 }
  0x1d   : > { %2708 = shalt.err (!%p2705_p8)
}
  0x1e   : > { %s2792_s7 = smov 1024   ;;  %s2793_s11 = smov 256  }
  0x1f   : > { %s2794_s12 = smov 16   ;;  %p207_p9 = scmp.lt.s32.totalorder %s2790_s21, 5 }
  0x20   : > { %2581 = dma.hbm_to_vmem [thread:$0]  (!%p2900_p12), %s198_s13, 1024, %s200_s15, %s188_s17, %s2792_s7, %s2793_s11, %s2794_s12  }
  0x21   : > { %p208_p0 = pnand %p2458_p13, %p207_p9 }
  0x23   : > { %211 = sbr.rel (%p208_p0) target bundleno = 828 (0x33c), region = 40 }
  0x28   : > { %s2919_s14 = sand.u32 1, %s2782_s19  }
  0x29   : > { %s2459_s23 = sshll.u32 %s2919_s14, 6  ;;  %s214_s25 = scalar_lea.sflag [#allocation3], %s2919_s14 }
  0x2a   : > { %s2925_s26 = scalar_lea.vmem [#allocation2], %s2459_s23 }
  0x2b   : > { %2769 = dma.done.wait (%p2879_p6), %s214_s25, 1024  }
  0x2c   : > { %2771 = vsyncadd (%p2879_p6), %s214_s25, 4294966272  ;;  %v2795_v0 = vmov 0   ;;  %v260_v1 = vld [vmem:[%s3873_s4 + $0x20] sm:$0xff]  ;;  %v258_v2 = vld [vmem:[%s3873_s4 + $0x10] sm:$0xff]  ;;  %vm348_vm0 = vcmask 261120   ;;  %v2796_v43 = vmov 1  }
  0x2d   : > { %2636 = vset.pattern.permute.xlu2 %v2795_v0  ;;  %2635 = vset.pattern.permute.xlu1 %v2795_v0  ;;  %v256_v3 = vld [vmem:[%s3873_s4] sm:$0xff]  ;;  %v2943_v4 = vpack.c.bf16 %v260_v1, %v260_v1  ;;  %v2945_v5 = vpack.c.bf16 %v258_v2, %v258_v2  ;;  %v254_v8 = vld [vmem:[%s2925_s26 + $0x30] sm:$0xff]  ;;  %v253_v9 = vld [vmem:[%s2925_s26 + $0x28] sm:$0xff]  ;;  %v2797_v50 = vmov 2   ;;  %v2798_v61 = vmov 839922192  }
  0x2e   : > { %2634 = vset.pattern.permute.xlu0 %v2795_v0  ;;  %v2947_v6 = vpack.c.bf16 %v256_v3, %v256_v3  ;;  %v252_v7 = vld [vmem:[%s2925_s26 + $0x20] sm:$0xff]  ;;  %v255_v11 = vld [vmem:[%s2925_s26 + $0x38] sm:$0xff]  ;;  %v250_v13 = vld [vmem:[%s2925_s26 + $0x10] sm:$0xff]  ;;  %v493_v62 = vunpack.c.l.s4 %v2798_v61  ;;  %s3820_s12 = scalar_lea.vmem [#allocation5], %s2459_s23  ;;  %s2573_s23 = sshll.u32 %s2857_s22, 4 }
  0x2f   : > { %3900 = vst [vmem:[#allocation8_spill] sm:$0xff] %v2943_v4  ;;  %v306_v10 = vpack.c.bf16 %v254_v8, %v252_v7  ;;  %v248_v12 = vld [vmem:[%s2925_s26] sm:$0xff]  ;;  %525 = vperm.xlu2 %2636, %v2943_v4   ;;  %507 = vperm.xlu1 %2635, %v2945_v5   ;;  %v307_v14 = vpack.c.bf16 %v255_v11, %v253_v9  ;;  %v249_v15 = vld [vmem:[%s2925_s26 + $0x8] sm:$0xff]  ;;  %v251_v16 = vld [vmem:[%s2925_s26 + $0x18] sm:$0xff]  ;;  %s2375_s15 = scalar_lea.hbm %s3874_s5, %s2573_s23  ;;  %s2376_s16 = sshll.u32 %s3820_s12, 4  ;;  %s2377_s16 = int_to_ptr.vmem [resolvable:$true] %s2376_s16 }
  0x30   : > { %3901 = vst [vmem:[#allocation9_spill] sm:$0xff] %v2945_v5  ;;  %489 = vperm.xlu0 %2634, %v2947_v6   ;;  %v304_v17 = vpack.c.bf16 %v250_v13, %v248_v12  ;;  %v261_v18 = vld [vmem:[%s3873_s4 + $0x28] sm:$0xff]  ;;  %v305_v19 = vpack.c.bf16 %v251_v16, %v249_v15  ;;  %v259_v20 = vld [vmem:[%s3873_s4 + $0x18] sm:$0xff]  ;;  %v2555_v22 = vld [vmem:[%s3870_s1] sm:$0xff]  ;;  %v3135_v2 = vunpack.c.0.s8 %v493_v62  ;;  %s2378_s22 = sshll.u32 %s2375_s15, 4  ;;  %s2364_s29 = scalar_lea.sflag [#allocation4], %s2919_s14  ;;  %s2379_s22 = int_to_ptr.hbm [resolvable:$true] %s2378_s22 }
  0x31   : > { %3902 = vst [vmem:[#allocation10_spill] sm:$0xff] %v2947_v6  ;;  %379 = vmatpush.bf16.msra.mxu0 %v306_v10  ;;  %428 = vmatpush.bf16.msra.mxu1 %v307_v14  ;;  %v257_v21 = vld [vmem:[%s3873_s4 + $0x8] sm:$0xff]  ;;  %v2972_v23 = vpack.c.bf16 %v261_v18, %v261_v18  ;;  %v2974_v24 = vpack.c.bf16 %v259_v20, %v259_v20  ;;  %v270_v26 = vld [vmem:[%s3873_s4 + $0x70] sm:$0xff]  ;;  %v263_v27 = vld [vmem:[%s3873_s4 + $0x38] sm:$0xff]  ;;  %s2738_s17 = sshra.s32 %s2379_s22, 4  ;;  %s2739_s17 = int_to_ptr.hbm [resolvable:$true] %s2738_s17 }
  0x32   : > { %v2976_v25 = vpack.c.bf16 %v257_v21, %v257_v21  ;;  %v262_v28 = vld [vmem:[%s3873_s4 + $0x30] sm:$0xff]  ;;  %v2992_v29 = vpack.c.bf16 %v270_v26, %v270_v26  ;;  %v2994_v30 = vpack.c.bf16 %v263_v27, %v263_v27  ;;  %v269_v32 = vld [vmem:[%s3873_s4 + $0x68] sm:$0xff]  ;;  %v268_v33 = vld [vmem:[%s3873_s4 + $0x60] sm:$0xff]  ;;  %s2740_s8 = scalar_lea.hbm %s2739_s17, 64  ;;  %p2745_p1 = scmp.lt.s32.totalorder %s2739_s17, %s3874_s5 }
  0x33   : > { %3903 = vst [vmem:[#allocation11_spill] sm:$0xff] %v2972_v23  ;;  %v2996_v31 = vpack.c.bf16 %v262_v28, %v262_v28  ;;  %v271_v34 = vld [vmem:[%s3873_s4 + $0x78] sm:$0xff]  ;;  %v2556_v35 = vld [vmem:[%s3870_s1 + $0x8] sm:$0xff]  ;;  %v3013_v36 = vpack.c.bf16 %v269_v32, %v269_v32  ;;  %v3015_v37 = vpack.c.bf16 %v268_v33, %v268_v33  ;;  %v266_v40 = vld [vmem:[%s3873_s4 + $0x50] sm:$0xff]  ;;  %p2741_p6 = scmp.ne.s32.totalorder %s2739_s17, %s2740_s8 }
  0x34   : > { %3904 = vst [vmem:[#allocation12_spill] sm:$0xff] %v2974_v24  ;;  %v3017_v38 = vpack.c.bf16 %v271_v34, %v271_v34  ;;  %v267_v39 = vld [vmem:[%s3873_s4 + $0x58] sm:$0xff]  ;;  %v3032_v42 = vpack.c.bf16 %v266_v40, %v266_v40  ;;  %v264_v44 = vld [vmem:[%s3873_s4 + $0x40] sm:$0xff]  ;;  %v2557_v45 = vld [vmem:[%s3870_s1 + $0x10] sm:$0xff] }
  0x35   : > { %380 = vmatpush.bf16.msra.mxu0 %v304_v17  ;;  %429 = vmatpush.bf16.msra.mxu1 %v305_v19  ;;  %3905 = vst [vmem:[#allocation13_spill] sm:$0xff] %v2976_v25  ;;  %v3030_v41 = vpack.c.bf16 %v267_v39, %v267_v39  ;;  %v265_v46 = vld [vmem:[%s3873_s4 + $0x48] sm:$0xff]  ;;  %v3047_v47 = vpack.c.bf16 %v264_v44, %v264_v44  ;;  %v2558_v49 = vld [vmem:[%s3870_s1 + $0x18] sm:$0xff]  ;;  %v2559_v51 = vld [vmem:[%s3870_s1 + $0x20] sm:$0xff]  ;;  %p2742_p12 = pnand %p2741_p6, %p2885_p10 }
  0x36   : > { %3906 = vst [vmem:[#allocation14_spill] sm:$0xff] %v2996_v31  ;;  %v3049_v48 = vpack.c.bf16 %v265_v46, %v265_v46  ;;  %v2560_v52 = vld [vmem:[%s3870_s1 + $0x28] sm:$0xff]  ;;  %v2561_v55 = vld [vmem:[%s3870_s1 + $0x30] sm:$0xff]  ;;  %v2562_v60 = vld [vmem:[%s3870_s1 + $0x38] sm:$0xff] }
  0x37   : > { %534 = vperm.xlu2 %2636, %v2972_v23   ;;  %516 = vperm.xlu1 %2635, %v2974_v24   ;;  %p2743_p13 = pneg %p2742_p12 }
  0x38   : > { %2493 = vmatmul.msk.bf16.vlgmr.msra.gmra.mxu0 %vm348_vm0, %v2555_v22  ;;  %2501 = vmatmul.msk.bf16.vlgmr.msra.gmra.mxu1 %vm348_vm0, %v2555_v22 }
  0x39   : > { %498 = vperm.xlu0 %2634, %v2976_v25  }
  0x3f   : > { %615 = vperm.xlu2 %2636, %v2992_v29   ;;  %552 = vperm.xlu1 %2635, %v2994_v30  }
  0x41   : > { %543 = vperm.xlu0 %2634, %v2996_v31  }
  0x47   : > { %606 = vperm.xlu2 %2636, %v3013_v36   ;;  %597 = vperm.xlu1 %2635, %v3015_v37  }
  0x48   : > { %2494 = vmatmul.msk.bf16.gmra.mxu0 %vm348_vm0, %v2556_v35  ;;  %2502 = vmatmul.msk.bf16.gmra.mxu1 %vm348_vm0, %v2556_v35 }
  0x49   : > { %624 = vperm.xlu0 %2634, %v3017_v38  }
  0x4f   : > { %2637 = vset.pattern.permute.xlu2 %v2796_v43  ;;  %588 = vperm.xlu1 %2635, %v3030_v41  }
  0x50   : > { %920 = vperm.xlu2 %2637, %v2992_v29  }
  0x51   : > { %579 = vperm.xlu0 %2634, %v3032_v42  }
  0x57   : > { %561 = vperm.xlu1 %2635, %v3047_v47  }
  0x58   : > { %2495 = vmatmul.msk.bf16.gmra.mxu0 %vm348_vm0, %v2557_v45  ;;  %2503 = vmatmul.msk.bf16.gmra.mxu1 %vm348_vm0, %v2557_v45 }
  0x59   : > { %2638 = vset.pattern.permute.xlu0 %v2796_v43  ;;  %2639 = vset.pattern.permute.xlu2 %v2795_v0 }
  0x5a   : > { %928 = vperm.xlu0 %2638, %v3017_v38   ;;  %570 = vperm.xlu2 %2639, %v3049_v48  }
  0x5f   : > { %2640 = vset.pattern.permute.xlu1 %v2796_v43 }
  0x60   : > { %904 = vperm.xlu1 %2640, %v3015_v37  }
  0x62   : > { %864 = vperm.xlu0 %2638, %v2994_v30   ;;  %2641 = vset.pattern.permute.xlu2 %v2796_v43 }
  0x63   : > { %912 = vperm.xlu2 %2641, %v3013_v36  }
  0x68   : > { %2496 = vmatmul.msk.bf16.gmra.mxu0 %vm348_vm0, %v2558_v49  ;;  %2504 = vmatmul.msk.bf16.gmra.mxu1 %vm348_vm0, %v2558_v49 }
  0x69   : > { %2642 = vset.pattern.permute.xlu1 %v2797_v50 }
  0x6a   : > { %2647 = vset.pattern.permute.xlu0 %v2797_v50  ;;  %1152 = vperm.xlu1 %2642, %v3017_v38  }
  0x6b   : > { %1144 = vperm.xlu0 %2647, %v2992_v29   ;;  %888 = vperm.xlu2 %2641, %v3032_v42  }
  0x72   : > { %2643 = vset.pattern.permute.xlu1 %v2796_v43 }
  0x73   : > { %1136 = vperm.xlu0 %2647, %v3013_v36   ;;  %2644 = vset.pattern.permute.xlu2 %v2797_v50 }
  0x74   : > { %896 = vperm.xlu1 %2643, %v3030_v41   ;;  %1128 = vperm.xlu2 %2644, %v3015_v37  }
  0x78   : > { %2497 = vmatmul.msk.bf16.gmra.mxu0 %vm348_vm0, %v2559_v51  ;;  %2505 = vmatmul.msk.bf16.gmra.mxu1 %vm348_vm0, %v2559_v51 }
  0x7b   : > { %1112 = vperm.xlu0 %2647, %v3032_v42  }
  0x7c   : > { %872 = vperm.xlu1 %2643, %v3047_v47   ;;  %2645 = vset.pattern.permute.xlu2 %v2796_v43 }
  0x7d   : > { %880 = vperm.xlu2 %2645, %v3049_v48  }
  0x83   : > { %1080 = vperm.xlu0 %2647, %v2996_v31  }
  0x84   : > { %2646 = vset.pattern.permute.xlu1 %v2797_v50 }
  0x85   : > { %1120 = vperm.xlu1 %2646, %v3030_v41   ;;  %856 = vperm.xlu2 %2645, %v2996_v31  }
  0x88   : > { %2498 = vmatmul.msk.bf16.gmra.mxu0 %vm348_vm0, %v2560_v52  ;;  %2506 = vmatmul.msk.bf16.gmra.mxu1 %vm348_vm0, %v2560_v52 }
  0x89   : > { %v3096_v53 = vpop.permute.xlu2 %525 }
  0x8b   : > { %1072 = vperm.xlu0 %2647, %v2972_v23  }
  0x8d   : > { %1096 = vperm.xlu1 %2646, %v3047_v47   ;;  %2648 = vset.pattern.permute.xlu2 %v2797_v50 }
  0x8e   : > { %1104 = vperm.xlu2 %2648, %v3049_v48  }
  0x91   : > { %v3102_v54 = vpop.permute.xlu2 %534 }
  0x93   : > { %1048 = vperm.xlu0 %2647, %v2945_v5  }
  0x95   : > { %2649 = vset.pattern.permute.xlu1 %v2796_v43 }
  0x96   : > { %840 = vperm.xlu1 %2649, %v2943_v4   ;;  %2650 = vset.pattern.permute.xlu2 %v2796_v43 }
  0x97   : > { %848 = vperm.xlu2 %2650, %v2972_v23  }
  0x98   : > { %2499 = vmatmul.msk.bf16.gmra.mxu0 %vm348_vm0, %v2561_v55  ;;  %2507 = vmatmul.msk.bf16.gmra.mxu1 %vm348_vm0, %v2561_v55 }
  0x99   : > { %v3114_v56 = vpop.permute.xlu2 %615 }
  0x9b   : > { %1040 = vperm.xlu0 %2647, %v2976_v25  }
  0x9e   : > { %2651 = vset.pattern.permute.xlu1 %v2797_v50 }
  0x9f   : > { %1088 = vperm.xlu1 %2651, %v2994_v30   ;;  %824 = vperm.xlu2 %2650, %v2945_v5  }
  0xa1   : > { %v508_v57 = vpop.permute.xlu1 %507  ;;  %v3120_v58 = vpop.permute.xlu2 %606 }
  0xa2   : > { %v490_v59 = vpop.permute.xlu0 %489  ;;  %v513_v40 = vperm.slane %v508_v57, %v3135_v2 }
  0xa3   : > { %v495_v3 = vperm.slane %v490_v59, %v3135_v2 }
  0xa4   : > { %v665_v59 = vunpack.c.l.bf16 %v513_v40 }
  0xa5   : > { %v663_v12 = vunpack.c.l.bf16 %v495_v3 }
  0xa7   : > { %2652 = vset.pattern.permute.xlu1 %v2796_v43  ;;  %2653 = vset.pattern.permute.xlu2 %v2797_v50 }
  0xa8   : > { %832 = vperm.xlu1 %2652, %v2974_v24   ;;  %2500 = vmatmul.msk.bf16.gmra.mxu0 %vm348_vm0, %v2562_v60 }
  0xa9   : > { %2508 = vmatmul.msk.bf16.gmra.mxu1 %vm348_vm0, %v2562_v60  ;;  %1064 = vperm.xlu2 %2653, %v2943_v4   ;;  %v3131_v63 = vpop.permute.xlu1 %516 }
  0xaa   : > { %v3133_v0 = vpop.permute.xlu2 %920 }
  0xab   : > { %v499_v1 = vpop.permute.xlu0 %498 }
  0xac   : > { %v504_v16 = vperm.slane %v499_v1, %v3135_v2 }
  0xae   : > { %v664_v32 = vunpack.c.l.bf16 %v504_v16 }
  0xb0   : > { %808 = vperm.xlu1 %2652, %v2947_v6  }
  0xb1   : > { %2654 = vset.pattern.permute.xlu2 %v2796_v43  ;;  %v3141_v7 = vpop.permute.xlu1 %552 }
  0xb2   : > { %816 = vperm.xlu2 %2654, %v2976_v25  }
  0xb3   : > { %v3143_v8 = vpop.permute.xlu0 %543 }
  0xb4   : > { %v3145_v10 = vpop.permute.xlu2 %570 }
  0xb5   : > { %v382_v9 = vpop.f32.mrf.mxu0  ;;  %v431_v11 = vpop.f32.mrf.mxu1 }
  0xb6   : > { %v471_v13 = vpack.c.bf16 %v431_v11, %v382_v9  ;;  %v522_v11 = vperm.slane %v3131_v63, %v3135_v2  ;;  %v531_v63 = vperm.slane %v3096_v53, %v3135_v2 }
  0xb8   : > { %v631_v14 = vunpack.c.l.bf16 %v471_v13  ;;  %v632_v15 = vunpack.c.h.bf16 %v471_v13  ;;  %2655 = vset.pattern.permute.xlu1 %v2797_v50 }
  0xb9   : > { %1056 = vperm.xlu1 %2655, %v2974_v24   ;;  %v3150_v19 = vpop.permute.xlu1 %597 }
  0xba   : > { %v679_v17 = vadd.f32 %v663_v12, %v631_v14  ;;  %v680_v18 = vadd.f32 %v663_v12, %v632_v15  ;;  %2656 = vset.pattern.permute.xlu2 %v2797_v50 }
  0xbb   : > { %v3153_v20 = vpop.permute.xlu0 %624  ;;  %1032 = vperm.xlu2 %2656, %v2947_v6  }
  0xbc   : > { %v759_v21 = vmax.f32 %v679_v17, 0.0  ;;  %v760_v22 = vmax.f32 %v680_v18, 0.0 }
  0xbd   : > { %v384_v26 = vpop.f32.mrf.mxu0  ;;  %v433_v27 = vpop.f32.mrf.mxu1 }
  0xbe   : > { %v3156_v28 = vpop.permute.xlu2 %912  ;;  %v472_v33 = vpack.c.bf16 %v433_v27, %v384_v26  ;;  %v3158_v34 = vpack.c.bf16 %v760_v22, %v759_v21  ;;  %v666_v22 = vunpack.c.l.bf16 %v522_v11 }
  0xc0   : > { %v633_v35 = vunpack.c.l.bf16 %v472_v33  ;;  %v634_v39 = vunpack.c.h.bf16 %v472_v33 }
  0xc1   : > { %v3161_v45 = vpop.permute.xlu1 %588 }
  0xc2   : > { %v681_v43 = vadd.f32 %v664_v32, %v633_v35  ;;  %v682_v44 = vadd.f32 %v664_v32, %v634_v39 }
  0xc3   : > { %v3163_v46 = vpop.permute.xlu0 %579 }
  0xc4   : > { %v761_v49 = vmax.f32 %v681_v43, 0.0  ;;  %v762_v50 = vmax.f32 %v682_v44, 0.0 }
  0xc5   : > { %v387_v51 = vpop.f32.mrf.mxu0  ;;  %v436_v52 = vpop.f32.mrf.mxu1 }
  0xc6   : > { %v3165_v55 = vpop.permute.xlu2 %888  ;;  %v473_v60 = vpack.c.bf16 %v436_v52, %v387_v51  ;;  %v3167_v61 = vpack.c.bf16 %v762_v50, %v761_v49 }
  0xc8   : > { %v635_v62 = vunpack.c.l.bf16 %v473_v60  ;;  %v636_v1 = vunpack.c.h.bf16 %v473_v60 }
  0xc9   : > { %v3169_v9 = vpop.permute.xlu1 %561 }
  0xca   : > { %v683_v3 = vadd.f32 %v665_v59, %v635_v62  ;;  %v684_v57 = vadd.f32 %v665_v59, %v636_v1  ;;  %v667_v59 = vunpack.c.l.bf16 %v531_v63 }
  0xcc   : > { %v763_v12 = vmax.f32 %v683_v3, 0.0  ;;  %v764_v13 = vmax.f32 %v684_v57, 0.0  ;;  %v3173_v14 = vpop.permute.xlu0 %928  ;;  %v540_v57 = vperm.slane %v3102_v54, %v3135_v2 }
  0xcd   : > { %v389_v15 = vpop.f32.mrf.mxu0  ;;  %v438_v16 = vpop.f32.mrf.mxu1 }
  0xce   : > { %v474_v17 = vpack.c.bf16 %v438_v16, %v389_v15  ;;  %v3175_v18 = vpop.permute.xlu2 %1128  ;;  %v3177_v21 = vpack.c.bf16 %v764_v13, %v763_v12  ;;  %v668_v54 = vunpack.c.l.bf16 %v540_v57 }
  0xd0   : > { %v637_v26 = vunpack.c.l.bf16 %v474_v17  ;;  %v638_v27 = vunpack.c.h.bf16 %v474_v17  ;;  %v2799_v17 = vmov 3  }
  0xd1   : > { %2657 = vset.pattern.permute.xlu1 %v2799_v17  ;;  %2658 = vset.pattern.permute.xlu2 %v2799_v17 }
  0xd2   : > { %v685_v32 = vadd.f32 %v666_v22, %v637_v26  ;;  %v686_v33 = vadd.f32 %v666_v22, %v638_v27  ;;  %v3179_v35 = vpop.permute.xlu1 %904  ;;  %1514 = vperm.xlu1 %2657, %v2947_v6   ;;  %1522 = vperm.xlu2 %2658, %v2976_v25  }
  0xd3   : > { %2659 = vset.pattern.permute.xlu0 %v2799_v17 }
  0xd4   : > { %v765_v39 = vmax.f32 %v685_v32, 0.0  ;;  %v766_v40 = vmax.f32 %v686_v33, 0.0  ;;  %v3183_v43 = vpop.permute.xlu0 %864  ;;  %1530 = vperm.xlu0 %2659, %v2945_v5  }
  0xd5   : > { %v392_v44 = vpop.f32.mrf.mxu0  ;;  %v441_v49 = vpop.f32.mrf.mxu1 }
  0xd6   : > { %v475_v50 = vpack.c.bf16 %v441_v49, %v392_v44  ;;  %v3185_v51 = vpack.c.bf16 %v766_v40, %v765_v39 }
  0xd7   : > { %v3187_v52 = vpop.permute.xlu2 %880 }
  0xd8   : > { %v639_v60 = vunpack.c.l.bf16 %v475_v50  ;;  %v640_v62 = vunpack.c.h.bf16 %v475_v50 }
  0xda   : > { %v687_v1 = vadd.f32 %v667_v59, %v639_v60  ;;  %v688_v3 = vadd.f32 %v667_v59, %v640_v62  ;;  %1538 = vperm.xlu1 %2657, %v2974_v24   ;;  %1546 = vperm.xlu2 %2658, %v2943_v4  }
  0xdc   : > { %v767_v53 = vmax.f32 %v687_v1, 0.0  ;;  %v768_v11 = vmax.f32 %v688_v3, 0.0  ;;  %v3191_v13 = vpop.permute.xlu1 %1152  ;;  %v549_v3 = vperm.slane %v3143_v8, %v3135_v2  ;;  %1570 = vperm.xlu0 %2659, %v2994_v30  }
  0xdd   : > { %v394_v12 = vpop.f32.mrf.mxu0  ;;  %3907 = vst [vmem:[#allocation15_spill] sm:$0xff] %v3191_v13  ;;  %v3193_v15 = vpop.permute.xlu0 %1144 }
  0xde   : > { %v443_v16 = vpop.f32.mrf.mxu1  ;;  %v3196_v26 = vpack.c.bf16 %v768_v11, %v767_v53  ;;  %v669_v53 = vunpack.c.l.bf16 %v549_v3 }
  0xdf   : > { %v476_v22 = vpack.c.bf16 %v443_v16, %v394_v12  ;;  %v3199_v27 = vpop.permute.xlu2 %856  ;;  %v558_v16 = vperm.slane %v3141_v7, %v3135_v2 }
  0xe1   : > { %v641_v32 = vunpack.c.l.bf16 %v476_v22  ;;  %v642_v33 = vunpack.c.h.bf16 %v476_v22 }
  0xe2   : > { %1554 = vperm.xlu1 %2657, %v2972_v23   ;;  %1562 = vperm.xlu2 %2658, %v2996_v31  }
  0xe3   : > { %v689_v63 = vadd.f32 %v668_v54, %v641_v32  ;;  %v690_v39 = vadd.f32 %v668_v54, %v642_v33 }
  0xe4   : > { %1594 = vperm.xlu0 %2659, %v3032_v42  }
  0xe5   : > { %v769_v40 = vmax.f32 %v689_v63, 0.0  ;;  %v770_v44 = vmax.f32 %v690_v39, 0.0  ;;  %v397_v49 = vpop.f32.mrf.mxu0  ;;  %v3202_v50 = vpop.permute.xlu0 %1136  ;;  %v670_v39 = vunpack.c.l.bf16 %v558_v16 }
  0xe6   : > { %v446_v59 = vpop.f32.mrf.mxu1  ;;  %v3204_v62 = vpop.permute.xlu1 %896 }
  0xe7   : > { %v477_v60 = vpack.c.bf16 %v446_v59, %v397_v49  ;;  %v3206_v1 = vpack.c.bf16 %v770_v44, %v769_v40 }
  0xe8   : > { %v3212_v57 = vpop.permute.xlu2 %1104 }
  0xe9   : > { %3908 = vst [vmem:[#allocation16_spill] sm:$0xff] %v3212_v57  ;;  %v643_v11 = vunpack.c.l.bf16 %v477_v60  ;;  %v644_v12 = vunpack.c.h.bf16 %v477_v60  ;;  %v1142_v57 = vperm.slane %v3202_v50, %v3135_v2 }
  0xea   : > { %1578 = vperm.xlu1 %2657, %v3047_v47   ;;  %1586 = vperm.xlu2 %2658, %v3049_v48  }
  0xeb   : > { %v691_v8 = vadd.f32 %v669_v53, %v643_v11  ;;  %v692_v63 = vadd.f32 %v669_v53, %v644_v12  ;;  %v926_v53 = vperm.slane %v3133_v0, %v3135_v2  ;;  %v576_v11 = vperm.slane %v3145_v10, %v3135_v2 }
  0xec   : > { %v603_v12 = vperm.slane %v3150_v19, %v3135_v2  ;;  %1610 = vperm.xlu0 %2659, %v3015_v37  }
  0xed   : > { %v399_v17 = vpop.f32.mrf.mxu0  ;;  %v3217_v22 = vpop.permute.xlu0 %1112  ;;  %v771_v59 = vmax.f32 %v691_v8, 0.0  ;;  %v772_v60 = vmax.f32 %v692_v63, 0.0  ;;  %v630_v8 = vperm.slane %v3153_v20, %v3135_v2  ;;  %v918_v20 = vperm.slane %v3156_v28, %v3135_v2 }
  0xee   : > { %3909 = vst [vmem:[#allocation17_spill] sm:$0xff] %v3217_v22  ;;  %v448_v54 = vpop.f32.mrf.mxu1  ;;  %v3219_v33 = vpop.permute.xlu1 %872  ;;  %v567_v28 = vperm.slane %v3169_v9, %v3135_v2  ;;  %v1134_v9 = vperm.slane %v3175_v18, %v3135_v2  ;;  %v3331_v22 = vunpack.c.l.bf16 %v1142_v57 }
  0xef   : > { %v478_v32 = vpack.c.bf16 %v448_v54, %v399_v17  ;;  %v621_v17 = vperm.slane %v3114_v56, %v3135_v2  ;;  %v612_v54 = vperm.slane %v3120_v58, %v3135_v2  ;;  %v862_v58 = vperm.slane %v3199_v27, %v3135_v2 }
  0xf0   : > { %v797_v0 = vpack.c.bf16 %v772_v60, %v771_v59  ;;  %v3259_v27 = vunpack.c.l.bf16 %v603_v12  ;;  %v585_v59 = vperm.slane %v3163_v46, %v3135_v2  ;;  %v894_v60 = vperm.slane %v3165_v55, %v3135_v2 }
  0xf1   : > { %v645_v40 = vunpack.c.l.bf16 %v478_v32  ;;  %v646_v44 = vunpack.c.h.bf16 %v478_v32  ;;  %v849_v49 = vpop.permute.xlu2 %848  ;;  %v3273_v12 = vunpack.c.l.bf16 %v918_v20  ;;  %v940_v20 = vunpack.c.h.bf16 %v3177_v21 }
  0xf2   : > { %1626 = vperm.xlu1 %2657, %v2992_v29   ;;  %1634 = vperm.xlu2 %2658, %v3017_v38   ;;  %v3302_v6 = vunpack.c.l.bf16 %v1134_v9 }
  0xf3   : > { %v693_v7 = vadd.f32 %v670_v39, %v645_v40  ;;  %v694_v3 = vadd.f32 %v670_v39, %v646_v44  ;;  %v3248_v39 = vunpack.c.l.bf16 %v621_v17  ;;  %v3250_v40 = vunpack.c.l.bf16 %v612_v54 }
  0xf4   : > { %v3255_v44 = vunpack.c.l.bf16 %v926_v53  ;;  %v973_v17 = vunpack.c.l.bf16 %v862_v58  ;;  %v947_v54 = vunpack.c.l.bf16 %v797_v0  ;;  %v948_v53 = vunpack.c.h.bf16 %v797_v0 }
  0xf5   : > { %v773_v24 = vmax.f32 %v693_v7, 0.0  ;;  %v402_v25 = vpop.f32.mrf.mxu0  ;;  %v774_v16 = vmax.f32 %v694_v3, 0.0  ;;  %v3236_v56 = vpop.permute.xlu0 %1080  ;;  %v3257_v7 = vunpack.c.l.bf16 %v576_v11  ;;  %v934_v3 = vperm.slane %v3173_v14, %v3135_v2 }
  0xf6   : > { %v451_v32 = vpop.f32.mrf.mxu1  ;;  %v870_v14 = vperm.slane %v3183_v43, %v3135_v2  ;;  %v3286_v0 = vunpack.c.l.bf16 %v585_v59  ;;  %v995_v18 = vmul.f32 %v973_v17, %v947_v54  ;;  %v996_v5 = vmul.f32 %v973_v17, %v948_v53 }
  0xf7   : > { %v3242_v63 = vpack.c.bf16 %v774_v16, %v773_v24  ;;  %v3244_v10 = vpack.c.bf16 %v451_v32, %v402_v25  ;;  %v3246_v19 = vpop.permute.xlu1 %1120  ;;  %v594_v24 = vperm.slane %v3161_v45, %v3135_v2  ;;  %v3263_v25 = vunpack.c.l.bf16 %v630_v8 }
  0xf8   : > { %3910 = vst [vmem:[#allocation18_spill] sm:$0xff] %v3246_v19  ;;  %v854_v45 = vperm.slane %v849_v49, %v3135_v2  ;;  %v910_v8 = vperm.slane %v3179_v35, %v3135_v2  ;;  %v3288_v49 = vunpack.c.l.bf16 %v894_v60  ;;  %v3293_v46 = vunpack.c.l.bf16 %v934_v3 }
  0xf9   : > { %v825_v11 = vpop.permute.xlu2 %824  ;;  %v3278_v55 = vunpack.c.l.bf16 %v594_v24  ;;  %v671_v24 = vunpack.c.l.bf16 %v567_v28  ;;  %v886_v35 = vperm.slane %v3187_v52, %v3135_v2  ;;  %v939_v60 = vunpack.c.l.bf16 %v3177_v21 }
  0xfa   : > { %3911 = vst [vmem:[#allocation19_spill] sm:$0xff] %v3288_v49  ;;  %v972_v59 = vunpack.c.l.bf16 %v854_v45  ;;  %v974_v28 = vunpack.c.l.bf16 %v870_v14  ;;  %v3304_v3 = vunpack.c.l.bf16 %v910_v8  ;;  %v945_v54 = vunpack.c.l.bf16 %v3206_v1  ;;  %1618 = vperm.xlu1 %2657, %v3013_v36  }
  0xfb   : > { %3912 = vst [vmem:[#allocation20_spill] sm:$0xff] %v3293_v46  ;;  %v946_v53 = vunpack.c.h.bf16 %v3206_v1  ;;  %v1086_v52 = vperm.slane %v3236_v56, %v3135_v2  ;;  %v830_v45 = vperm.slane %v825_v11, %v3135_v2  ;;  %v1021_v23 = vpack.c.bf16 %v996_v5, %v995_v18 }
  0xfc   : > { %v647_v21 = vunpack.c.l.bf16 %v3244_v10  ;;  %v648_v9 = vunpack.c.h.bf16 %v3244_v10  ;;  %v3317_v8 = vunpack.c.l.bf16 %v886_v35  ;;  %v993_v17 = vmul.f32 %v972_v59, %v945_v54 }
  0xfd   : > { %v404_v16 = vpop.f32.mrf.mxu0  ;;  %v1073_v32 = vpop.permute.xlu0 %1072  ;;  %v994_v4 = vmul.f32 %v972_v59, %v946_v53  ;;  %v949_v11 = vunpack.c.l.bf16 %v3242_v63  ;;  %v950_v5 = vunpack.c.h.bf16 %v3242_v63  ;;  %v1197_v14 = vunpack.c.l.bf16 %v1086_v52 }
  0xfe   : > { %v453_v58 = vpop.f32.mrf.mxu1  ;;  %3914 = vst [vmem:[#allocation22_spill] sm:$0xff] %v3317_v8  ;;  %v969_v35 = vunpack.c.l.bf16 %v830_v45  ;;  %v695_v59 = vadd.f32 %v671_v24, %v647_v21  ;;  %v696_v53 = vadd.f32 %v671_v24, %v648_v9  ;;  %v1078_v63 = vperm.slane %v1073_v32, %v3135_v2 }
  0xff   : > { %v3295_v43 = vpop.permute.xlu1 %1096  ;;  %v1020_v56 = vpack.c.bf16 %v994_v4, %v993_v17  ;;  %v1172_v19 = vunpack.c.h.bf16 %v1021_v23  ;;  %v997_v52 = vmul.f32 %v974_v28, %v949_v11  ;;  %v998_v45 = vmul.f32 %v974_v28, %v950_v5 }
 0x100   : > { %3913 = vst [vmem:[#allocation21_spill] sm:$0xff] %v3295_v43  ;;  %v480_v43 = vpack.c.bf16 %v453_v58, %v404_v16  ;;  %v1171_v58 = vunpack.c.l.bf16 %v1021_v23  ;;  %v987_v46 = vmul.f32 %v969_v35, %v939_v60  ;;  %v988_v49 = vmul.f32 %v969_v35, %v940_v20 }
 0x101   : > { %v3337_v4 = vadd.f32 %v1197_v14, %v1172_v19  ;;  %v775_v32 = vmax.f32 %v695_v59, 0.0  ;;  %v776_v17 = vmax.f32 %v696_v53, 0.0  ;;  %v1196_v21 = vunpack.c.l.bf16 %v1078_v63 }
 0x102   : > { %v649_v13 = vunpack.c.l.bf16 %v480_v43  ;;  %v650_v10 = vunpack.c.h.bf16 %v480_v43  ;;  %v3333_v54 = vadd.f32 %v1197_v14, %v1171_v58  ;;  %v1169_v43 = vunpack.c.l.bf16 %v1020_v56  ;;  %1602 = vperm.xlu1 %2657, %v3030_v41  }
 0x103   : > { %v3314_v31 = vpop.permute.xlu2 %1064  ;;  %v3342_v5 = vpack.c.bf16 %v998_v45, %v997_v52  ;;  %v1170_v19 = vunpack.c.h.bf16 %v1020_v56 }
 0x104   : > { %v697_v23 = vadd.f32 %v3257_v7, %v649_v13  ;;  %v698_v28 = vadd.f32 %v3257_v7, %v650_v10  ;;  %v1299_v35 = vmax.f32 %v3333_v54, 0.0  ;;  %v3347_v13 = vpack.c.bf16 %v776_v17, %v775_v32 }
 0x105   : > { %v407_v1 = vpop.f32.mrf.mxu0  ;;  %v1049_v16 = vpop.permute.xlu0 %1048  ;;  %v3351_v58 = vadd.f32 %v1196_v21, %v1169_v43  ;;  %v3353_v59 = vadd.f32 %v1196_v21, %v1170_v19  ;;  %v1173_v52 = vunpack.c.l.bf16 %v3342_v5 }
 0x106   : > { %v456_v18 = vpop.f32.mrf.mxu1  ;;  %v777_v53 = vmax.f32 %v697_v23, 0.0 }
 0x107   : > { %v481_v50 = vpack.c.bf16 %v456_v18, %v407_v1  ;;  %v1054_v1 = vperm.slane %v1049_v16, %v3135_v2  ;;  %v1017_v18 = vpack.c.bf16 %v988_v49, %v987_v46  ;;  %v778_v46 = vmax.f32 %v698_v28, 0.0 }
 0x108   : > { %v841_v8 = vpop.permute.xlu1 %840 }
 0x109   : > { %v651_v60 = vunpack.c.l.bf16 %v481_v50  ;;  %v652_v20 = vunpack.c.h.bf16 %v481_v50  ;;  %v846_v7 = vperm.slane %v841_v8, %v3135_v2  ;;  %v1193_v49 = vunpack.c.l.bf16 %v1054_v1 }
 0x10a   : > { %v1070_v8 = vperm.slane %v3314_v31, %v3135_v2  ;;  %v1163_v45 = vunpack.c.l.bf16 %v1017_v18  ;;  %v1164_v43 = vunpack.c.h.bf16 %v1017_v18  ;;  %v3361_v28 = vpack.c.bf16 %v778_v46, %v777_v53 }
 0x10b   : > { %v699_v56 = vadd.f32 %v3286_v0, %v651_v60  ;;  %v700_v63 = vadd.f32 %v3286_v0, %v652_v20  ;;  %v971_v21 = vunpack.c.l.bf16 %v846_v7  ;;  %v3915_v7 = vunpack.c.l.bf16 %v3167_v61 }
 0x10c   : > { %v817_v57 = vpop.permute.xlu2 %816  ;;  %v3366_v20 = vadd.f32 %v1193_v49, %v1163_v45  ;;  %v3368_v18 = vadd.f32 %v1193_v49, %v1164_v43  ;;  %v3916_v53 = vunpack.c.h.bf16 %v3167_v61  ;;  %v3374_v24 = vunpack.c.l.bf16 %v1070_v8 }
 0x10d   : > { %v409_v9 = vpop.f32.mrf.mxu0  ;;  %v822_v14 = vperm.slane %v817_v57, %v3135_v2  ;;  %v779_v31 = vmax.f32 %v699_v56, 0.0  ;;  %v3917_v60 = vunpack.c.l.bf16 %v3196_v26 }
 0x10e   : > { %v458_v11 = vpop.f32.mrf.mxu1 }
 0x10f   : > { %v482_v10 = vpack.c.bf16 %v458_v11, %v409_v9  ;;  %v968_v32 = vunpack.c.l.bf16 %v822_v14  ;;  %v1174_v9 = vunpack.c.h.bf16 %v3342_v5  ;;  %v780_v11 = vmax.f32 %v700_v63, 0.0  ;;  %v1041_v14 = vpop.permute.xlu0 %1040 }
 0x110   : > { %v991_v45 = vmul.f32 %v971_v21, %v3917_v60  ;;  %v1046_v43 = vperm.slane %v1041_v14, %v3135_v2 }
 0x111   : > { %v1089_v50 = vpop.permute.xlu1 %1088  ;;  %v653_v57 = vunpack.c.l.bf16 %v482_v10  ;;  %v654_v23 = vunpack.c.h.bf16 %v482_v10  ;;  %v985_v10 = vmul.f32 %v968_v32, %v3915_v7  ;;  %v986_v5 = vmul.f32 %v968_v32, %v3916_v53 }
 0x112   : > { %v1094_v17 = vperm.slane %v1089_v50, %v3135_v2  ;;  %v3383_v16 = vpack.c.bf16 %v780_v11, %v779_v31 }
 0x113   : > { %v701_v56 = vadd.f32 %v3278_v55, %v653_v57  ;;  %v702_v63 = vadd.f32 %v3278_v55, %v654_v23  ;;  %v1016_v32 = vpack.c.bf16 %v986_v5, %v985_v10  ;;  %v2801_v10 = vmov 5  }
 0x114   : > { %v1198_v19 = vunpack.c.l.bf16 %v1094_v17  ;;  %v3918_v17 = vunpack.c.h.bf16 %v3196_v26  ;;  %2663 = vset.pattern.permute.xlu0 %v2801_v10 }
 0x115   : > { %v412_v1 = vpop.f32.mrf.mxu0  ;;  %v781_v55 = vmax.f32 %v701_v56, 0.0  ;;  %v1033_v14 = vpop.permute.xlu2 %1032  ;;  %2082 = vperm.xlu0 %2663, %v3017_v38  }
 0x116   : > { %v461_v50 = vpop.f32.mrf.mxu1  ;;  %v992_v49 = vmul.f32 %v971_v21, %v3918_v17  ;;  %v1221_v61 = vadd.f32 %v1198_v19, %v1173_v52  ;;  %v782_v21 = vmax.f32 %v702_v63, 0.0  ;;  %v1222_v5 = vadd.f32 %v1198_v19, %v1174_v9 }
 0x117   : > { %v483_v46 = vpack.c.bf16 %v461_v50, %v412_v1  ;;  %v3893_v50 = vmov 4   ;;  %v1161_v17 = vunpack.c.l.bf16 %v1016_v32  ;;  %v1038_v53 = vperm.slane %v1033_v14, %v3135_v2 }
 0x118   : > { %2660 = vset.pattern.permute.xlu2 %v3893_v50  ;;  %2661 = vset.pattern.permute.xlu1 %v3893_v50  ;;  %v3394_v52 = vpack.c.bf16 %v992_v49, %v991_v45  ;;  %v1301_v63 = vmax.f32 %v1221_v61, 0.0  ;;  %v956_v61 = vunpack.c.h.bf16 %v3383_v16 }
 0x119   : > { %v655_v0 = vunpack.c.l.bf16 %v483_v46  ;;  %v656_v7 = vunpack.c.h.bf16 %v483_v46  ;;  %1850 = vperm.xlu2 %2660, %v2992_v29   ;;  %1842 = vperm.xlu1 %2661, %v3013_v36  }
 0x11a   : > { %v833_v57 = vpop.permute.xlu1 %832 }
 0x11b   : > { %v703_v1 = vadd.f32 %v3259_v27, %v655_v0  ;;  %v704_v60 = vadd.f32 %v3259_v27, %v656_v7  ;;  %v838_v23 = vperm.slane %v833_v57, %v3135_v2  ;;  %v1192_v0 = vunpack.c.l.bf16 %v1046_v43 }
 0x11c   : > { %v1162_v7 = vunpack.c.h.bf16 %v1016_v32  ;;  %v3399_v43 = vpack.c.bf16 %v782_v21, %v781_v55  ;;  %v3920_v57 = vunpack.c.h.bf16 %v3185_v51  ;;  %v3411_v32 = vpack.c.bf16 %v1301_v63, %v1299_v35 }
 0x11d   : > { %v783_v27 = vmax.f32 %v703_v1, 0.0  ;;  %v784_v31 = vmax.f32 %v704_v60, 0.0  ;;  %v414_v11 = vpop.f32.mrf.mxu0  ;;  %v970_v46 = vunpack.c.l.bf16 %v838_v23  ;;  %v3919_v1 = vunpack.c.l.bf16 %v3185_v51  ;;  %2018 = vperm.xlu0 %2663, %v2994_v30  }
 0x11e   : > { %v463_v56 = vpop.f32.mrf.mxu1  ;;  %v1302_v55 = vmax.f32 %v1222_v5, 0.0  ;;  %v957_v14 = vunpack.c.l.bf16 %v3399_v43 }
 0x11f   : > { %v803_v45 = vpack.c.bf16 %v784_v31, %v783_v27  ;;  %v484_v49 = vpack.c.bf16 %v463_v56, %v414_v11  ;;  %v989_v60 = vmul.f32 %v970_v46, %v3919_v1  ;;  %v990_v26 = vmul.f32 %v970_v46, %v3920_v57 }
 0x120   : > { %v3418_v46 = vadd.f32 %v1192_v0, %v1161_v17  ;;  %v3921_v17 = vmax.f32 %v3337_v4, 0.0 }
 0x121   : > { %v959_v9 = vunpack.c.l.bf16 %v803_v45  ;;  %v960_v19 = vunpack.c.h.bf16 %v803_v45  ;;  %v657_v23 = vunpack.c.l.bf16 %v484_v49  ;;  %v658_v8 = vunpack.c.h.bf16 %v484_v49  ;;  %1834 = vperm.xlu2 %2660, %v3015_v37   ;;  %1818 = vperm.xlu1 %2661, %v3032_v42  }
 0x122   : > { %v3407_v50 = vpack.c.bf16 %v990_v26, %v989_v60  ;;  %v809_v27 = vpop.permute.xlu1 %808  ;;  %v3420_v26 = vadd.f32 %v1192_v0, %v1162_v7  ;;  %v3429_v0 = vpack.c.bf16 %v1302_v55, %v3921_v17  ;;  %v1167_v7 = vunpack.c.l.bf16 %v3394_v52 }
 0x123   : > { %v705_v21 = vadd.f32 %v3250_v40, %v657_v23  ;;  %v706_v51 = vadd.f32 %v3250_v40, %v658_v8  ;;  %v1007_v31 = vmul.f32 %v3304_v3, %v959_v9  ;;  %v1008_v11 = vmul.f32 %v3304_v3, %v960_v19 }
 0x124   : > { %v814_v54 = vperm.slane %v809_v27, %v3135_v2  ;;  %v1191_v40 = vunpack.c.l.bf16 %v1038_v53  ;;  %v1165_v3 = vunpack.c.l.bf16 %v3407_v50  ;;  %v1166_v1 = vunpack.c.h.bf16 %v3407_v50 }
 0x125   : > { %v785_v35 = vmax.f32 %v705_v21, 0.0  ;;  %v786_v5 = vmax.f32 %v706_v51, 0.0  ;;  %v1027_v8 = vpack.c.bf16 %v1008_v11, %v1007_v31  ;;  %v417_v63 = vpop.f32.mrf.mxu0  ;;  %v3922_v53 = vunpack.c.l.bf16 %v3158_v34 }
 0x126   : > { %v967_v56 = vunpack.c.l.bf16 %v814_v54  ;;  %v466_v49 = vpop.f32.mrf.mxu1  ;;  %v3923_v19 = vunpack.c.h.bf16 %v3158_v34  ;;  %v1215_v51 = vadd.f32 %v3374_v24, %v1167_v7 }
 0x127   : > { %v804_v45 = vpack.c.bf16 %v786_v5, %v785_v35  ;;  %v1183_v60 = vunpack.c.l.bf16 %v1027_v8  ;;  %v1184_v57 = vunpack.c.h.bf16 %v1027_v8  ;;  %v485_v21 = vpack.c.bf16 %v466_v49, %v417_v63 }
 0x128   : > { %v983_v9 = vmul.f32 %v967_v56, %v3922_v53  ;;  %v984_v23 = vmul.f32 %v967_v56, %v3923_v19  ;;  %v1295_v35 = vmax.f32 %v1215_v51, 0.0  ;;  %v3925_v51 = vmov 4  }
 0x129   : > { %v961_v4 = vunpack.c.l.bf16 %v804_v45  ;;  %v962_v55 = vunpack.c.h.bf16 %v804_v45  ;;  %v1231_v27 = vadd.f32 %v3302_v6, %v1183_v60  ;;  %v1232_v31 = vadd.f32 %v3302_v6, %v1184_v57  ;;  %2662 = vset.pattern.permute.xlu2 %v2801_v10  ;;  %2665 = vset.pattern.permute.xlu1 %v2801_v10 }
 0x12a   : > { %v1015_v11 = vpack.c.bf16 %v984_v23, %v983_v9  ;;  %v659_v54 = vunpack.c.l.bf16 %v485_v21  ;;  %v660_v50 = vunpack.c.h.bf16 %v485_v21  ;;  %2074 = vperm.xlu2 %2662, %v2992_v29   ;;  %2058 = vperm.xlu1 %2665, %v3015_v37   ;;  %v3924_v60 = vmax.f32 %v3351_v58, 0.0 }
 0x12b   : > { %v1009_v5 = vmul.f32 %v3273_v12, %v961_v4  ;;  %v1010_v8 = vmul.f32 %v3273_v12, %v962_v55  ;;  %v1311_v17 = vmax.f32 %v1231_v27, 0.0  ;;  %v1312_v34 = vmax.f32 %v1232_v31, 0.0  ;;  %v1057_v49 = vpop.permute.xlu1 %1056  ;;  %2672 = vset.pattern.permute.xlu0 %v3925_v51 }
 0x12c   : > { %v707_v56 = vadd.f32 %v3248_v39, %v659_v54  ;;  %v708_v63 = vadd.f32 %v3248_v39, %v660_v50  ;;  %v1159_v7 = vunpack.c.l.bf16 %v1015_v11  ;;  %v1160_v45 = vunpack.c.h.bf16 %v1015_v11  ;;  %1858 = vperm.xlu0 %2672, %v3017_v38  }
 0x12d   : > { %v1062_v6 = vperm.slane %v1057_v49, %v3135_v2  ;;  %v1028_v12 = vpack.c.bf16 %v1010_v8, %v1009_v5  ;;  %v3451_v57 = vpack.c.bf16 %v3924_v60, %v1295_v35  ;;  %v1168_v39 = vunpack.c.h.bf16 %v3394_v52  ;;  %v419_v21 = vpop.f32.mrf.mxu0 }
 0x12e   : > { %v787_v53 = vmax.f32 %v707_v56, 0.0  ;;  %v788_v9 = vmax.f32 %v708_v63, 0.0  ;;  %v1207_v19 = vadd.f32 %v1191_v40, %v1159_v7  ;;  %v1208_v23 = vadd.f32 %v1191_v40, %v1160_v45  ;;  %v468_v55 = vpop.f32.mrf.mxu1 }
 0x12f   : > { %v1194_v4 = vunpack.c.l.bf16 %v1062_v6  ;;  %v1185_v27 = vunpack.c.l.bf16 %v1028_v12  ;;  %v1186_v29 = vunpack.c.h.bf16 %v1028_v12  ;;  %v1216_v37 = vadd.f32 %v3374_v24, %v1168_v39 }
 0x130   : > { %v805_v58 = vpack.c.bf16 %v788_v9, %v787_v53  ;;  %v486_v31 = vpack.c.bf16 %v468_v55, %v419_v21  ;;  %v1287_v11 = vmax.f32 %v1207_v19, 0.0  ;;  %v1289_v52 = vmax.f32 %v3418_v46, 0.0 }
 0x131   : > { %v1213_v54 = vadd.f32 %v1194_v4, %v1165_v3  ;;  %v1214_v50 = vadd.f32 %v1194_v4, %v1166_v1  ;;  %v1233_v40 = vadd.f32 %v3331_v22, %v1185_v27  ;;  %v1234_v35 = vadd.f32 %v3331_v22, %v1186_v29 }
 0x132   : > { %v963_v5 = vunpack.c.l.bf16 %v805_v58  ;;  %v964_v8 = vunpack.c.h.bf16 %v805_v58  ;;  %v661_v56 = vunpack.c.l.bf16 %v486_v31  ;;  %v662_v63 = vunpack.c.h.bf16 %v486_v31  ;;  %2664 = vset.pattern.permute.xlu2 %v3925_v51  ;;  %2667 = vset.pattern.permute.xlu1 %v3925_v51 }
 0x133   : > { %v1313_v7 = vmax.f32 %v1233_v40, 0.0  ;;  %v1314_v45 = vmax.f32 %v1234_v35, 0.0  ;;  %v1296_v24 = vmax.f32 %v1216_v37, 0.0  ;;  %v1293_v49 = vmax.f32 %v1213_v54, 0.0  ;;  %1826 = vperm.xlu2 %2664, %v3030_v41   ;;  %1810 = vperm.xlu1 %2667, %v3049_v48  }
 0x134   : > { %v709_v38 = vadd.f32 %v3263_v25, %v661_v56  ;;  %v710_v6 = vadd.f32 %v3263_v25, %v662_v63  ;;  %v1011_v46 = vmul.f32 %v3255_v44, %v963_v5  ;;  %v1012_v3 = vmul.f32 %v3255_v44, %v964_v8  ;;  %1802 = vperm.xlu0 %2672, %v3047_v47   ;;  %v3933_v5 = vld [vmem:[#allocation20_spill] sm:$0xff] }
 0x135   : > { %v3464_v1 = vpack.c.bf16 %v1313_v7, %v1311_v17  ;;  %v3466_v12 = vpack.c.bf16 %v1314_v45, %v1312_v34  ;;  %v3926_v22 = vmax.f32 %v3353_v59, 0.0  ;;  %v1294_v39 = vmax.f32 %v1214_v50, 0.0  ;;  %v3935_v45 = vld [vmem:[#allocation18_spill] sm:$0xff] }
 0x136   : > { %v958_v53 = vunpack.c.h.bf16 %v3399_v43  ;;  %v789_v25 = vmax.f32 %v709_v38, 0.0  ;;  %v790_v9 = vmax.f32 %v710_v6, 0.0  ;;  %v3927_v44 = vmax.f32 %v3366_v20, 0.0 }
 0x137   : > { %v3472_v60 = vpack.c.bf16 %v3926_v22, %v1296_v24  ;;  %v3928_v34 = vmax.f32 %v3368_v18, 0.0  ;;  %v3485_v59 = vpack.c.bf16 %v1289_v52, %v1287_v11  ;;  %v1288_v21 = vmax.f32 %v1208_v23, 0.0  ;;  %v3936_v24 = vld [vmem:[#allocation22_spill] sm:$0xff] }
 0x138   : > { %v3479_v17 = vpack.c.bf16 %v1293_v49, %v3927_v44  ;;  %v1290_v4 = vmax.f32 %v3420_v26, 0.0  ;;  %v1150_v55 = vperm.slane %v3193_v15, %v3135_v2  ;;  %v3929_v27 = vperm.slane %v3204_v62, %v3135_v2 }
 0x139   : > { %v3483_v19 = vpack.c.bf16 %v1294_v39, %v3928_v34  ;;  %v806_v29 = vpack.c.bf16 %v790_v9, %v789_v25  ;;  %v1029_v37 = vpack.c.bf16 %v1012_v3, %v1011_v46  ;;  %v3930_v18 = vperm.slane %v3219_v33, %v3135_v2  ;;  %v3932_v33 = vld [vmem:[#allocation19_spill] sm:$0xff] }
 0x13a   : > { %v978_v20 = vunpack.c.l.bf16 %v3929_v27  ;;  %v953_v31 = vunpack.c.l.bf16 %v3361_v28  ;;  %v954_v23 = vunpack.c.h.bf16 %v3361_v28  ;;  %v3499_v26 = vpack.c.bf16 %v1290_v4, %v1288_v21  ;;  %v3939_v4 = vld [vmem:[#allocation16_spill] sm:$0xff] }
 0x13b   : > { %v975_v58 = vunpack.c.l.bf16 %v3930_v18  ;;  %v965_v11 = vunpack.c.l.bf16 %v806_v29  ;;  %v966_v52 = vunpack.c.h.bf16 %v806_v29  ;;  %v951_v62 = vunpack.c.l.bf16 %v3347_v13  ;;  %2666 = vset.pattern.permute.xlu2 %v2801_v10  ;;  %2668 = vset.pattern.permute.xlu1 %v2801_v10 }
 0x13c   : > { %v1005_v15 = vmul.f32 %v978_v20, %v957_v14  ;;  %v1006_v54 = vmul.f32 %v978_v20, %v958_v53  ;;  %v952_v50 = vunpack.c.h.bf16 %v3347_v13  ;;  %v3931_v40 = vunpack.c.l.bf16 %v3383_v16  ;;  %v3934_v14 = vld [vmem:[#allocation17_spill] sm:$0xff]  ;;  %2066 = vperm.xlu2 %2666, %v3013_v36   ;;  %2050 = vperm.xlu1 %2668, %v3030_v41  }
 0x13d   : > { %v1004_v28 = vmul.f32 %v3932_v33, %v956_v61  ;;  %v1013_v8 = vmul.f32 %v3933_v5, %v965_v11  ;;  %v1014_v56 = vmul.f32 %v3933_v5, %v966_v52  ;;  %v1187_v63 = vunpack.c.l.bf16 %v1029_v37  ;;  %v3937_v61 = vld [vmem:[#allocation15_spill] sm:$0xff]  ;;  %1794 = vperm.xlu0 %2672, %v2994_v30   ;;  %v3940_v36 = vld [vmem:[#allocation21_spill] sm:$0xff] }
 0x13e   : > { %v1003_v35 = vmul.f32 %v3932_v33, %v3931_v40  ;;  %v1188_v43 = vunpack.c.h.bf16 %v1029_v37  ;;  %v1118_v7 = vperm.slane %v3934_v14, %v3135_v2  ;;  %v1126_v13 = vperm.slane %v3935_v45, %v3135_v2  ;;  %v3941_v45 = vld [vmem:[#allocation8_spill] sm:$0xff] }
 0x13f   : > { %v1001_v49 = vmul.f32 %v3936_v24, %v953_v31  ;;  %v1002_v38 = vmul.f32 %v3936_v24, %v954_v23  ;;  %v1205_v6 = vunpack.c.l.bf16 %v1150_v55  ;;  %v1030_v16 = vpack.c.bf16 %v1014_v56, %v1013_v8 }
 0x140   : > { %v1026_v46 = vpack.c.bf16 %v1006_v54, %v1005_v15  ;;  %v3938_v3 = vperm.slane %v3937_v61, %v3135_v2  ;;  %v999_v39 = vmul.f32 %v975_v58, %v951_v62  ;;  %v1000_v53 = vmul.f32 %v975_v58, %v952_v50 }
 0x141   : > { %v1025_v25 = vpack.c.bf16 %v1004_v28, %v1003_v35  ;;  %v1189_v9 = vunpack.c.l.bf16 %v1030_v16  ;;  %v1235_v44 = vadd.f32 %v1205_v6, %v1187_v63  ;;  %v1190_v34 = vunpack.c.h.bf16 %v1030_v16 }
 0x142   : > { %v1206_v22 = vunpack.c.l.bf16 %v3938_v3  ;;  %v1236_v21 = vadd.f32 %v1205_v6, %v1188_v43  ;;  %v1110_v55 = vperm.slane %v3939_v4, %v3135_v2  ;;  %v1201_v27 = vunpack.c.l.bf16 %v1118_v7  ;;  %v3534_v6 = vpop.permute.xlu2 %1522 }
 0x143   : > { %v1202_v20 = vunpack.c.l.bf16 %v1126_v13  ;;  %v1024_v29 = vpack.c.bf16 %v1002_v38, %v1001_v49  ;;  %v1181_v58 = vunpack.c.l.bf16 %v1026_v46  ;;  %v1182_v31 = vunpack.c.h.bf16 %v1026_v46 }
 0x144   : > { %v1237_v37 = vadd.f32 %v1206_v22, %v1189_v9  ;;  %v1238_v18 = vadd.f32 %v1206_v22, %v1190_v34  ;;  %v1023_v23 = vpack.c.bf16 %v1000_v53, %v999_v39  ;;  %v1102_v41 = vperm.slane %v3940_v36, %v3135_v2  ;;  %2042 = vperm.xlu2 %2666, %v3032_v42   ;;  %v3942_v9 = vld [vmem:[#allocation14_spill] sm:$0xff]  ;;  %v3545_v4 = vpop.permute.xlu1 %1514  ;;  %v2566_v36 = vld [vmem:[%s3871_s2 + $0x18] sm:$0xff] }
 0x145   : > { %v1179_v11 = vunpack.c.l.bf16 %v1025_v25  ;;  %v1180_v52 = vunpack.c.h.bf16 %v1025_v25  ;;  %v1315_v15 = vmax.f32 %v1235_v44, 0.0  ;;  %v1316_v62 = vmax.f32 %v1236_v21, 0.0  ;;  %2026 = vperm.xlu1 %2668, %v3047_v47   ;;  %1770 = vperm.xlu0 %2672, %v3941_v45   ;;  %v3943_v44 = vld [vmem:[#allocation11_spill] sm:$0xff]  ;;  %v3944_v34 = vld [vmem:[#allocation10_spill] sm:$0xff] }
 0x146   : > { %v1317_v54 = vmax.f32 %v1237_v37, 0.0  ;;  %v1318_v30 = vmax.f32 %v1238_v18, 0.0  ;;  %v1200_v50 = vunpack.c.l.bf16 %v1110_v55  ;;  %v1177_v40 = vunpack.c.l.bf16 %v1024_v29  ;;  %v3945_v55 = vld [vmem:[#allocation9_spill] sm:$0xff] }
 0x147   : > { %v1178_v33 = vunpack.c.h.bf16 %v1024_v29  ;;  %v1229_v5 = vadd.f32 %v1202_v20, %v1181_v58  ;;  %v1230_v8 = vadd.f32 %v1202_v20, %v1182_v31  ;;  %v1199_v56 = vunpack.c.l.bf16 %v1102_v41 }
 0x148   : > { %v1333_v35 = vpack.c.bf16 %v1317_v54, %v1315_v15  ;;  %v1334_v28 = vpack.c.bf16 %v1318_v30, %v1316_v62  ;;  %v1175_v63 = vunpack.c.l.bf16 %v1023_v23  ;;  %v1176_v43 = vunpack.c.h.bf16 %v1023_v23  ;;  %v2567_v54 = vld [vmem:[%s3871_s2 + $0x20] sm:$0xff] }
 0x149   : > { %v1227_v14 = vadd.f32 %v1201_v27, %v1179_v11  ;;  %v1228_v7 = vadd.f32 %v1201_v27, %v1180_v52  ;;  %v1309_v13 = vmax.f32 %v1229_v5, 0.0  ;;  %v1310_v24 = vmax.f32 %v1230_v8, 0.0  ;;  %v3946_v27 = vld [vmem:[#allocation13_spill] sm:$0xff] }
 0x14a   : > { %1399 = vmatpush.bf16.msra.mxu2 %v1333_v35  ;;  %1448 = vmatpush.bf16.msra.mxu3 %v1334_v28  ;;  %v1225_v49 = vadd.f32 %v1200_v50, %v1177_v40  ;;  %v1226_v38 = vadd.f32 %v1200_v50, %v1178_v33  ;;  %v1223_v16 = vadd.f32 %v1199_v56, %v1175_v63  ;;  %v3543_v21 = vpop.permute.xlu2 %1546  ;;  %v2568_v35 = vld [vmem:[%s3871_s2 + $0x28] sm:$0xff] }
 0x14b   : > { %v1224_v46 = vadd.f32 %v1199_v56, %v1176_v43  ;;  %v1307_v42 = vmax.f32 %v1227_v14, 0.0  ;;  %v1308_v47 = vmax.f32 %v1228_v7, 0.0  ;;  %v2569_v43 = vld [vmem:[%s3871_s2 + $0x30] sm:$0xff] }
 0x14c   : > { %v1305_v22 = vmax.f32 %v1225_v49, 0.0  ;;  %v1306_v39 = vmax.f32 %v1226_v38, 0.0  ;;  %2669 = vset.pattern.permute.xlu2 %v3925_v51  ;;  %v1303_v53 = vmax.f32 %v1223_v16, 0.0  ;;  %v3558_v29 = vpop.permute.xlu1 %1538 }
 0x14d   : > { %v1329_v61 = vpack.c.bf16 %v1309_v13, %v1307_v42  ;;  %v1330_v3 = vpack.c.bf16 %v1310_v24, %v1308_v47  ;;  %2671 = vset.pattern.permute.xlu1 %v3925_v51  ;;  %v1304_v25 = vmax.f32 %v1224_v46, 0.0  ;;  %1786 = vperm.xlu2 %2669, %v3942_v9   ;;  %v2570_v24 = vld [vmem:[%s3871_s2 + $0x38] sm:$0xff] }
 0x14e   : > { %1400 = vmatpush.bf16.msra.mxu2 %v3464_v1  ;;  %1449 = vmatpush.bf16.msra.mxu3 %v3466_v12  ;;  %v1327_v1 = vpack.c.bf16 %v1305_v22, %v1303_v53 }
 0x14f   : > { %1778 = vperm.xlu1 %2671, %v3943_v44   ;;  %v1328_v12 = vpack.c.bf16 %v1306_v39, %v1304_v25  ;;  %1738 = vperm.xlu0 %2672, %v3944_v34  }
 0x152   : > { %1401 = vmatpush.bf16.msra.mxu2 %v1329_v61  ;;  %1450 = vmatpush.bf16.msra.mxu3 %v1330_v3  ;;  %v3556_v20 = vpop.permute.xlu2 %1562  ;;  %v1520_v61 = vperm.slane %v3545_v4, %v3135_v2 }
 0x154   : > { %v1673_v25 = vunpack.c.l.bf16 %v1520_v61 }
 0x155   : > { %2670 = vset.pattern.permute.xlu2 %v2801_v10 }
 0x156   : > { %1402 = vmatpush.bf16.msra.mxu2 %v1327_v1  ;;  %1451 = vmatpush.bf16.msra.mxu3 %v1328_v12 }
 0x157   : > { %1754 = vperm.xlu1 %2671, %v3945_v55   ;;  %2034 = vperm.xlu2 %2670, %v3049_v48   ;;  %v2563_v48 = vld [vmem:[%s3871_s2] sm:$0xff] }
 0x158   : > { %2678 = vset.pattern.permute.xlu0 %v2801_v10 }
 0x159   : > { %1970 = vperm.xlu0 %2678, %v3946_v27  }
 0x15a   : > { %1403 = vmatpush.bf16.msra.mxu2 %v3411_v32  ;;  %1452 = vmatpush.bf16.msra.mxu3 %v3429_v0  ;;  %v3570_v32 = vpop.permute.xlu1 %1554  ;;  %v3572_v0 = vpop.permute.xlu2 %1586 }
 0x15e   : > { %1404 = vmatpush.bf16.msra.mxu2 %v3451_v57  ;;  %1453 = vmatpush.bf16.msra.mxu3 %v3472_v60  ;;  %v3947_v57 = vld [vmem:[#allocation12_spill] sm:$0xff] }
 0x15f   : > { %2674 = vset.pattern.permute.xlu1 %v2801_v10  ;;  %2010 = vperm.xlu2 %2670, %v3942_v9  }
 0x160   : > { %1994 = vperm.xlu1 %2674, %v3941_v45  }
 0x162   : > { %1405 = vmatpush.bf16.msra.mxu2 %v3479_v17  ;;  %1454 = vmatpush.bf16.msra.mxu3 %v3483_v19  ;;  %v3578_v60 = vpop.permute.xlu1 %1578  ;;  %v2564_v17 = vld [vmem:[%s3871_s2 + $0x8] sm:$0xff]  ;;  %v3584_v19 = vpop.permute.xlu2 %1634 }
 0x166   : > { %1406 = vmatpush.bf16.msra.mxu2 %v3485_v59  ;;  %1455 = vmatpush.bf16.msra.mxu3 %v3499_v26  ;;  %v2565_v26 = vld [vmem:[%s3871_s2 + $0x10] sm:$0xff] }
 0x167   : > { %2673 = vset.pattern.permute.xlu2 %v3925_v51 }
 0x168   : > { %2676 = vset.pattern.permute.xlu1 %v3925_v51  ;;  %1762 = vperm.xlu2 %2673, %v3947_v57  }
 0x169   : > { %1407 = vmatmul.bf16.vlgmr.msra.gmra.mxu2 %v2563_v48  ;;  %1456 = vmatmul.bf16.vlgmr.msra.gmra.mxu3 %v2563_v48 }
 0x16a   : > { %1746 = vperm.xlu1 %2676, %v3946_v27   ;;  %v3589_v51 = vpop.permute.xlu1 %1626 }
 0x170   : > { %2675 = vset.pattern.permute.xlu2 %v2801_v10 }
 0x171   : > { %2002 = vperm.xlu2 %2675, %v3943_v44  }
 0x172   : > { %2677 = vset.pattern.permute.xlu1 %v2801_v10  ;;  %v3597_v37 = vpop.permute.xlu1 %1618  ;;  %v3600_v10 = vpop.permute.xlu0 %1530 }
 0x173   : > { %1986 = vperm.xlu1 %2677, %v3947_v57   ;;  %v3592_v59 = vpop.permute.xlu2 %1850 }
 0x179   : > { %1412 = vmatmul.bf16.gmra.mxu2 %v2564_v17  ;;  %1461 = vmatmul.bf16.gmra.mxu3 %v2564_v17 }
 0x17a   : > { %1978 = vperm.xlu2 %2675, %v3945_v55   ;;  %v3604_v58 = vpop.permute.xlu1 %1602  ;;  %v3606_v31 = vpop.permute.xlu0 %1570  ;;  %v1528_v55 = vperm.slane %v3534_v6, %v3135_v2  ;;  %v1536_v6 = vperm.slane %v3600_v10, %v3135_v2 }
 0x17b   : > { %v3602_v18 = vpop.permute.xlu2 %1834 }
 0x182   : > { %1962 = vperm.xlu2 %2675, %v3944_v34   ;;  %v3615_v11 = vpop.permute.xlu0 %1594 }
 0x184   : > { %v3608_v23 = vpop.permute.xlu2 %2074 }
 0x189   : > { %1417 = vmatmul.bf16.gmra.mxu2 %v2565_v26  ;;  %1466 = vmatmul.bf16.gmra.mxu3 %v2565_v26 }
 0x18a   : > { %v3624_v62 = vpop.permute.xlu0 %1610 }
 0x18b   : > { %v3613_v41 = vpop.permute.xlu1 %1842 }
 0x18d   : > { %v3617_v52 = vpop.permute.xlu2 %1826 }
 0x192   : > { %v3630_v40 = vpop.permute.xlu0 %2082 }
 0x193   : > { %v3619_v15 = vpop.permute.xlu1 %1818  ;;  %3949 = vst [vmem:[#allocation20_spill] sm:$0xff] %v3630_v40 }
 0x196   : > { %v3626_v30 = vpop.permute.xlu2 %2066 }
 0x199   : > { %1422 = vmatmul.bf16.gmra.mxu2 %v2566_v36  ;;  %1471 = vmatmul.bf16.gmra.mxu3 %v2566_v36 }
 0x19a   : > { %v3639_v5 = vpop.permute.xlu0 %2018 }
 0x19c   : > { %v3628_v50 = vpop.permute.xlu1 %2058 }
 0x19d   : > { %3948 = vst [vmem:[#allocation19_spill] sm:$0xff] %v3628_v50 }
 0x19e   : > { %v3632_v33 = vpop.permute.xlu2 %2042 }
 0x19f   : > { %3950 = vst [vmem:[#allocation17_spill] sm:$0xff] %v3632_v33 }
 0x1a2   : > { %v3645_v63 = vpop.permute.xlu0 %1858 }
 0x1a5   : > { %v3637_v28 = vpop.permute.xlu1 %1810 }
 0x1a7   : > { %v3641_v8 = vpop.permute.xlu2 %1786 }
 0x1a9   : > { %1427 = vmatmul.bf16.gmra.mxu2 %v2567_v54  ;;  %1476 = vmatmul.bf16.gmra.mxu3 %v2567_v54  ;;  %v1674_v54 = vunpack.c.l.bf16 %v1528_v55 }
 0x1aa   : > { %v3654_v45 = vpop.permute.xlu0 %1802 }
 0x1ae   : > { %v3643_v56 = vpop.permute.xlu1 %2050 }
 0x1af   : > { %3951 = vst [vmem:[#allocation18_spill] sm:$0xff] %v3643_v56 }
 0x1b1   : > { %v3650_v14 = vpop.permute.xlu2 %2034 }
 0x1b2   : > { %v3663_v38 = vpop.permute.xlu0 %1794 }
 0x1b7   : > { %v3652_v7 = vpop.permute.xlu1 %2026 }
 0x1b9   : > { %1432 = vmatmul.bf16.gmra.mxu2 %v2568_v35  ;;  %1481 = vmatmul.bf16.gmra.mxu3 %v2568_v35  ;;  %v3656_v13 = vpop.permute.xlu2 %2010 }
 0x1ba   : > { %v3669_v42 = vpop.permute.xlu0 %1770 }
 0x1c1   : > { %v3661_v49 = vpop.permute.xlu1 %1778 }
 0x1c2   : > { %v3665_v16 = vpop.permute.xlu2 %1762  ;;  %v1739_v22 = vpop.permute.xlu0 %1738 }
 0x1c3   : > { %v1744_v34 = vperm.slane %v1739_v22, %v3135_v2 }
 0x1c5   : > { %v1897_v4 = vunpack.c.l.bf16 %v1744_v34 }
 0x1c9   : > { %1437 = vmatmul.bf16.gmra.mxu2 %v2569_v43  ;;  %1486 = vmatmul.bf16.gmra.mxu3 %v2569_v43  ;;  %v3667_v46 = vpop.permute.xlu1 %1754 }
 0x1cb   : > { %v3671_v47 = vpop.permute.xlu2 %2002 }
 0x1d2   : > { %v3675_v3 = vpop.permute.xlu1 %1994 }
 0x1d4   : > { %v3677_v44 = vpop.permute.xlu2 %1978 }
 0x1d9   : > { %1442 = vmatmul.bf16.gmra.mxu2 %v2570_v24  ;;  %1491 = vmatmul.bf16.gmra.mxu3 %v2570_v24 }
 0x1dc   : > { %v1747_v17 = vpop.permute.xlu1 %1746  ;;  %v1963_v56 = vpop.permute.xlu2 %1962 }
 0x1dd   : > { %v1752_v61 = vperm.slane %v1747_v17, %v3135_v2  ;;  %v1968_v34 = vperm.slane %v1963_v56, %v3135_v2  ;;  %v1760_v56 = vperm.slane %v3667_v46, %v3135_v2 }
 0x1df   : > { %v2121_v33 = vunpack.c.l.bf16 %v1968_v34 }
 0x1ec   : > { %v1408_v39 = vpop.f32.mrf.mxu2  ;;  %v1457_v53 = vpop.f32.mrf.mxu3 }
 0x1ed   : > { %v1497_v9 = vpack.c.bf16 %v1457_v53, %v1408_v39 }
 0x1ef   : > { %v1641_v1 = vunpack.c.l.bf16 %v1497_v9  ;;  %v1642_v12 = vunpack.c.h.bf16 %v1497_v9 }
 0x1f1   : > { %v1689_v27 = vadd.f32 %v1673_v25, %v1641_v1  ;;  %v1690_v48 = vadd.f32 %v1673_v25, %v1642_v12 }
 0x1f3   : > { %v1721_v57 = vpack.c.bf16 %v1690_v48, %v1689_v27  ;;  %v1971_v27 = vpop.permute.xlu0 %1970  ;;  %v1898_v48 = vunpack.c.l.bf16 %v1752_v61 }
 0x1f4   : > { %v1410_v26 = vpop.f32.mrf.mxu2  ;;  %v1459_v36 = vpop.f32.mrf.mxu3 }
 0x1f5   : > { %v1865_v35 = vunpack.c.l.bf16 %v1721_v57  ;;  %v1866_v43 = vunpack.c.h.bf16 %v1721_v57  ;;  %v1498_v24 = vpack.c.bf16 %v1459_v36, %v1410_v26  ;;  %v1675_v36 = vunpack.c.l.bf16 %v1536_v6 }
 0x1f7   : > { %v1913_v39 = vmul.f32 %v1897_v4, %v1865_v35  ;;  %v1914_v53 = vmul.f32 %v1897_v4, %v1866_v43  ;;  %v1643_v9 = vunpack.c.l.bf16 %v1498_v24  ;;  %v1644_v22 = vunpack.c.h.bf16 %v1498_v24 }
 0x1f8   : > { %v1976_v4 = vperm.slane %v1971_v27, %v3135_v2 }
 0x1f9   : > { %v1691_v25 = vadd.f32 %v1674_v54, %v1643_v9  ;;  %v1692_v1 = vadd.f32 %v1674_v54, %v1644_v22  ;;  %v1945_v12 = vpack.c.bf16 %v1914_v53, %v1913_v39  ;;  %v1544_v54 = vperm.slane %v3558_v29, %v3135_v2 }
 0x1fa   : > { %v2122_v22 = vunpack.c.l.bf16 %v1976_v4  ;;  %v1768_v29 = vperm.slane %v3665_v16, %v3135_v2  ;;  %v1552_v16 = vperm.slane %v3543_v21, %v3135_v2 }
 0x1fb   : > { %v1722_v55 = vpack.c.bf16 %v1692_v1, %v1691_v25  ;;  %v2089_v43 = vunpack.c.l.bf16 %v1945_v12  ;;  %v2090_v24 = vunpack.c.h.bf16 %v1945_v12  ;;  %v1676_v34 = vunpack.c.l.bf16 %v1544_v54 }
 0x1fc   : > { %v1413_v57 = vpop.f32.mrf.mxu2  ;;  %v1462_v26 = vpop.f32.mrf.mxu3 }
 0x1fd   : > { %v1867_v17 = vunpack.c.l.bf16 %v1722_v55  ;;  %v1868_v35 = vunpack.c.h.bf16 %v1722_v55  ;;  %v1499_v40 = vpack.c.bf16 %v1462_v26, %v1413_v57  ;;  %v2137_v6 = vadd.f32 %v2121_v33, %v2089_v43 }
 0x1fe   : > { %v2138_v25 = vadd.f32 %v2121_v33, %v2090_v24  ;;  %v1899_v57 = vunpack.c.l.bf16 %v1760_v56 }
 0x1ff   : > { %v1915_v10 = vmul.f32 %v1898_v48, %v1867_v17  ;;  %v1916_v9 = vmul.f32 %v1898_v48, %v1868_v35  ;;  %v1645_v61 = vunpack.c.l.bf16 %v1499_v40  ;;  %v1646_v39 = vunpack.c.h.bf16 %v1499_v40 }
 0x200   : > { %v2217_v4 = vmax.f32 %v2137_v6, 0.0  ;;  %v2218_v43 = vmax.f32 %v2138_v25, 0.0  ;;  %v1987_v6 = vpop.permute.xlu1 %1986 }
 0x201   : > { %v1946_v53 = vpack.c.bf16 %v1916_v9, %v1915_v10  ;;  %v1693_v1 = vadd.f32 %v1675_v36, %v1645_v61  ;;  %v1694_v27 = vadd.f32 %v1675_v36, %v1646_v39 }
 0x203   : > { %v2091_v55 = vunpack.c.l.bf16 %v1946_v53  ;;  %v2092_v12 = vunpack.c.h.bf16 %v1946_v53  ;;  %v1723_v26 = vpack.c.bf16 %v1694_v27, %v1693_v1  ;;  %v1900_v27 = vunpack.c.l.bf16 %v1768_v29 }
 0x204   : > { %v1415_v48 = vpop.f32.mrf.mxu2  ;;  %v1464_v17 = vpop.f32.mrf.mxu3 }
 0x205   : > { %v2139_v35 = vadd.f32 %v2122_v22, %v2091_v55  ;;  %v2140_v46 = vadd.f32 %v2122_v22, %v2092_v12  ;;  %v1500_v50 = vpack.c.bf16 %v1464_v17, %v1415_v48  ;;  %v1869_v40 = vunpack.c.l.bf16 %v1723_v26 }
 0x206   : > { %v1870_v10 = vunpack.c.h.bf16 %v1723_v26  ;;  %v1984_v22 = vperm.slane %v3677_v44, %v3135_v2  ;;  %v1677_v17 = vunpack.c.l.bf16 %v1552_v16  ;;  %v1776_v44 = vperm.slane %v3669_v42, %v3135_v2 }
 0x207   : > { %v1647_v33 = vunpack.c.l.bf16 %v1500_v50  ;;  %v1648_v24 = vunpack.c.h.bf16 %v1500_v50  ;;  %v2219_v36 = vmax.f32 %v2139_v35, 0.0  ;;  %v2220_v9 = vmax.f32 %v2140_v46, 0.0 }
 0x208   : > { %v1917_v61 = vmul.f32 %v1899_v57, %v1869_v40  ;;  %v1918_v54 = vmul.f32 %v1899_v57, %v1870_v10  ;;  %v2123_v35 = vunpack.c.l.bf16 %v1984_v22  ;;  %v1901_v22 = vunpack.c.l.bf16 %v1776_v44 }
 0x209   : > { %v1695_v56 = vadd.f32 %v1676_v34, %v1647_v33  ;;  %v1696_v39 = vadd.f32 %v1676_v34, %v1648_v24  ;;  %v3693_v53 = vpack.c.bf16 %v2219_v36, %v2217_v4  ;;  %v3695_v1 = vpack.c.bf16 %v2220_v9, %v2218_v43 }
 0x20a   : > { %v1947_v25 = vpack.c.bf16 %v1918_v54, %v1917_v61  ;;  %v1992_v34 = vperm.slane %v1987_v6, %v3135_v2  ;;  %v1560_v9 = vperm.slane %v3570_v32, %v3135_v2 }
 0x20b   : > { %v1724_v50 = vpack.c.bf16 %v1696_v39, %v1695_v56 }
 0x20c   : > { %v1418_v55 = vpop.f32.mrf.mxu2  ;;  %v1467_v12 = vpop.f32.mrf.mxu3  ;;  %v2093_v46 = vunpack.c.l.bf16 %v1947_v25  ;;  %v2094_v40 = vunpack.c.h.bf16 %v1947_v25  ;;  %v2124_v36 = vunpack.c.l.bf16 %v1992_v34  ;;  %v1678_v42 = vunpack.c.l.bf16 %v1560_v9 }
 0x20d   : > { %v1871_v26 = vunpack.c.l.bf16 %v1724_v50  ;;  %v1872_v57 = vunpack.c.h.bf16 %v1724_v50  ;;  %v1501_v48 = vpack.c.bf16 %v1467_v12, %v1418_v55 }
 0x20e   : > { %v2141_v61 = vadd.f32 %v2123_v35, %v2093_v46  ;;  %v2142_v16 = vadd.f32 %v2123_v35, %v2094_v40 }
 0x20f   : > { %v1649_v10 = vunpack.c.l.bf16 %v1501_v48  ;;  %v1650_v21 = vunpack.c.h.bf16 %v1501_v48  ;;  %v1919_v4 = vmul.f32 %v1900_v27, %v1871_v26  ;;  %v1920_v43 = vmul.f32 %v1900_v27, %v1872_v57 }
 0x210   : > { %v1784_v26 = vperm.slane %v3661_v49, %v3135_v2  ;;  %v2221_v48 = vmax.f32 %v2141_v61, 0.0  ;;  %v2222_v32 = vmax.f32 %v2142_v16, 0.0  ;;  %v2000_v49 = vperm.slane %v3675_v3, %v3135_v2 }
 0x211   : > { %v1697_v29 = vadd.f32 %v1677_v17, %v1649_v10  ;;  %v1698_v33 = vadd.f32 %v1677_v17, %v1650_v21  ;;  %v1948_v24 = vpack.c.bf16 %v1920_v43, %v1919_v4  ;;  %v1568_v43 = vperm.slane %v3556_v20, %v3135_v2 }
 0x212   : > { %v1792_v20 = vperm.slane %v3641_v8, %v3135_v2 }
 0x213   : > { %v1725_v54 = vpack.c.bf16 %v1698_v33, %v1697_v29  ;;  %v2095_v56 = vunpack.c.l.bf16 %v1948_v24  ;;  %v2096_v39 = vunpack.c.h.bf16 %v1948_v24  ;;  %v1902_v33 = vunpack.c.l.bf16 %v1784_v26 }
 0x214   : > { %v1420_v6 = vpop.f32.mrf.mxu2  ;;  %v1469_v25 = vpop.f32.mrf.mxu3 }
 0x215   : > { %v1873_v50 = vunpack.c.l.bf16 %v1725_v54  ;;  %v1874_v27 = vunpack.c.h.bf16 %v1725_v54  ;;  %v2143_v55 = vadd.f32 %v2124_v36, %v2095_v56  ;;  %v2144_v12 = vadd.f32 %v2124_v36, %v2096_v39 }
 0x216   : > { %v1502_v57 = vpack.c.bf16 %v1469_v25, %v1420_v6  ;;  %v1679_v56 = vunpack.c.l.bf16 %v1568_v43  ;;  %v2008_v39 = vperm.slane %v3671_v47, %v3135_v2  ;;  %v2125_v6 = vunpack.c.l.bf16 %v2000_v49 }
 0x217   : > { %v2223_v34 = vmax.f32 %v2143_v55, 0.0  ;;  %v2224_v17 = vmax.f32 %v2144_v12, 0.0  ;;  %v1921_v21 = vmul.f32 %v1901_v22, %v1873_v50  ;;  %v1922_v35 = vmul.f32 %v1901_v22, %v1874_v27 }
 0x218   : > { %v1651_v46 = vunpack.c.l.bf16 %v1502_v57  ;;  %v1652_v10 = vunpack.c.h.bf16 %v1502_v57  ;;  %v1903_v47 = vunpack.c.l.bf16 %v1792_v20  ;;  %v1584_v20 = vperm.slane %v3578_v60, %v3135_v2 }
 0x219   : > { %v3708_v40 = vpack.c.bf16 %v2223_v34, %v2221_v48  ;;  %v3710_v4 = vpack.c.bf16 %v2224_v17, %v2222_v32  ;;  %v1949_v61 = vpack.c.bf16 %v1922_v35, %v1921_v21  ;;  %v2126_v48 = vunpack.c.l.bf16 %v2008_v39 }
 0x21a   : > { %v1699_v44 = vadd.f32 %v1678_v42, %v1651_v46  ;;  %v1700_v29 = vadd.f32 %v1678_v42, %v1652_v10  ;;  %v1576_v42 = vperm.slane %v3606_v31, %v3135_v2 }
 0x21b   : > { %v2097_v55 = vunpack.c.l.bf16 %v1949_v61  ;;  %v2098_v12 = vunpack.c.h.bf16 %v1949_v61 }
 0x21c   : > { %v1726_v24 = vpack.c.bf16 %v1700_v29, %v1699_v44  ;;  %v1423_v36 = vpop.f32.mrf.mxu2  ;;  %v1472_v9 = vpop.f32.mrf.mxu3  ;;  %v1680_v43 = vunpack.c.l.bf16 %v1576_v42 }
 0x21d   : > { %v1503_v54 = vpack.c.bf16 %v1472_v9, %v1423_v36  ;;  %v2145_v8 = vadd.f32 %v2125_v6, %v2097_v55  ;;  %v2146_v35 = vadd.f32 %v2125_v6, %v2098_v12 }
 0x21e   : > { %v1875_v16 = vunpack.c.l.bf16 %v1726_v24  ;;  %v1876_v22 = vunpack.c.h.bf16 %v1726_v24 }
 0x21f   : > { %v1653_v25 = vunpack.c.l.bf16 %v1503_v54  ;;  %v1654_v50 = vunpack.c.h.bf16 %v1503_v54 }
 0x220   : > { %v1923_v27 = vmul.f32 %v1902_v33, %v1875_v16  ;;  %v1924_v3 = vmul.f32 %v1902_v33, %v1876_v22  ;;  %v1800_v33 = vperm.slane %v3663_v38, %v3135_v2  ;;  %v2226_v16 = vmax.f32 %v2146_v35, 0.0 }
 0x221   : > { %v1701_v26 = vadd.f32 %v1679_v56, %v1653_v25  ;;  %v1702_v57 = vadd.f32 %v1679_v56, %v1654_v50  ;;  %v2225_v56 = vmax.f32 %v2145_v8, 0.0  ;;  %v2016_v50 = vperm.slane %v3656_v13, %v3135_v2 }
 0x222   : > { %v1950_v34 = vpack.c.bf16 %v1924_v3, %v1923_v27  ;;  %v1904_v55 = vunpack.c.l.bf16 %v1800_v33  ;;  %v1808_v35 = vperm.slane %v3654_v45, %v3135_v2 }
 0x223   : > { %v1727_v32 = vpack.c.bf16 %v1702_v57, %v1701_v26  ;;  %v2024_v57 = vperm.slane %v3639_v5, %v3135_v2  ;;  %v1592_v5 = vperm.slane %v3572_v0, %v3135_v2 }
 0x224   : > { %v1425_v17 = vpop.f32.mrf.mxu2  ;;  %v1474_v46 = vpop.f32.mrf.mxu3  ;;  %v2099_v10 = vunpack.c.l.bf16 %v1950_v34  ;;  %v2100_v21 = vunpack.c.h.bf16 %v1950_v34 }
 0x225   : > { %v1877_v44 = vunpack.c.l.bf16 %v1727_v32  ;;  %v1878_v29 = vunpack.c.h.bf16 %v1727_v32  ;;  %v1504_v49 = vpack.c.bf16 %v1474_v46, %v1425_v17  ;;  %v2127_v32 = vunpack.c.l.bf16 %v2016_v50 }
 0x226   : > { %v2147_v31 = vadd.f32 %v2126_v48, %v2099_v10  ;;  %v2148_v24 = vadd.f32 %v2126_v48, %v2100_v21  ;;  %v1682_v45 = vunpack.c.l.bf16 %v1592_v5 }
 0x227   : > { %v1655_v36 = vunpack.c.l.bf16 %v1504_v49  ;;  %v1656_v9 = vunpack.c.h.bf16 %v1504_v49  ;;  %v1925_v61 = vmul.f32 %v1903_v47, %v1877_v44  ;;  %v1926_v54 = vmul.f32 %v1903_v47, %v1878_v29 }
 0x228   : > { %v2227_v39 = vmax.f32 %v2147_v31, 0.0  ;;  %v2228_v22 = vmax.f32 %v2148_v24, 0.0  ;;  %v1681_v47 = vunpack.c.l.bf16 %v1584_v20 }
 0x229   : > { %v1703_v6 = vadd.f32 %v1680_v43, %v1655_v36  ;;  %v1704_v25 = vadd.f32 %v1680_v43, %v1656_v9  ;;  %v1951_v27 = vpack.c.bf16 %v1926_v54, %v1925_v61  ;;  %v2128_v43 = vunpack.c.l.bf16 %v2024_v57 }
 0x22a   : > { %v3728_v38 = vpack.c.bf16 %v2227_v39, %v2225_v56  ;;  %v3730_v3 = vpack.c.bf16 %v2228_v22, %v2226_v16  ;;  %v1905_v61 = vunpack.c.l.bf16 %v1808_v35 }
 0x22b   : > { %v1728_v12 = vpack.c.bf16 %v1704_v25, %v1703_v6  ;;  %v2101_v17 = vunpack.c.l.bf16 %v1951_v27  ;;  %v2102_v46 = vunpack.c.h.bf16 %v1951_v27  ;;  %v1816_v6 = vperm.slane %v3637_v28, %v3135_v2 }
 0x22c   : > { %v1428_v42 = vpop.f32.mrf.mxu2  ;;  %v1477_v26 = vpop.f32.mrf.mxu3  ;;  %v2032_v28 = vperm.slane %v3652_v7, %v3135_v2 }
 0x22d   : > { %v1879_v48 = vunpack.c.l.bf16 %v1728_v12  ;;  %v1880_v34 = vunpack.c.h.bf16 %v1728_v12  ;;  %v1505_v60 = vpack.c.bf16 %v1477_v26, %v1428_v42  ;;  %v2149_v33 = vadd.f32 %v2127_v32, %v2101_v17 }
 0x22e   : > { %v2150_v9 = vadd.f32 %v2127_v32, %v2102_v46  ;;  %v1906_v32 = vunpack.c.l.bf16 %v1816_v6 }
 0x22f   : > { %v1657_v13 = vunpack.c.l.bf16 %v1505_v60  ;;  %v1658_v10 = vunpack.c.h.bf16 %v1505_v60  ;;  %v1927_v8 = vmul.f32 %v1904_v55, %v1879_v48  ;;  %v1928_v21 = vmul.f32 %v1904_v55, %v1880_v34 }
 0x230   : > { %v2229_v0 = vmax.f32 %v2149_v33, 0.0  ;;  %v2230_v55 = vmax.f32 %v2150_v9, 0.0 }
 0x231   : > { %v1705_v44 = vadd.f32 %v1681_v47, %v1657_v13  ;;  %v1706_v29 = vadd.f32 %v1681_v47, %v1658_v10  ;;  %v1952_v49 = vpack.c.bf16 %v1928_v21, %v1927_v8  ;;  %v2040_v8 = vperm.slane %v3650_v14, %v3135_v2 }
 0x233   : > { %v1729_v31 = vpack.c.bf16 %v1706_v29, %v1705_v44  ;;  %v2103_v24 = vunpack.c.l.bf16 %v1952_v49  ;;  %v2104_v36 = vunpack.c.h.bf16 %v1952_v49  ;;  %v2129_v29 = vunpack.c.l.bf16 %v2032_v28 }
 0x234   : > { %v1430_v54 = vpop.f32.mrf.mxu2  ;;  %v1479_v56 = vpop.f32.mrf.mxu3  ;;  %v2130_v33 = vunpack.c.l.bf16 %v2040_v8 }
 0x235   : > { %v1881_v39 = vunpack.c.l.bf16 %v1729_v31  ;;  %v1882_v16 = vunpack.c.h.bf16 %v1729_v31  ;;  %v1506_v22 = vpack.c.bf16 %v1479_v56, %v1430_v54  ;;  %v2151_v20 = vadd.f32 %v2128_v43, %v2103_v24 }
 0x236   : > { %v2152_v25 = vadd.f32 %v2128_v43, %v2104_v36 }
 0x237   : > { %v1659_v50 = vunpack.c.l.bf16 %v1506_v22  ;;  %v1660_v27 = vunpack.c.h.bf16 %v1506_v22  ;;  %v1929_v12 = vmul.f32 %v1905_v61, %v1881_v39  ;;  %v1930_v42 = vmul.f32 %v1905_v61, %v1882_v16 }
 0x238   : > { %v2231_v26 = vmax.f32 %v2151_v20, 0.0  ;;  %v2232_v57 = vmax.f32 %v2152_v25, 0.0 }
 0x239   : > { %v1707_v48 = vadd.f32 %v1682_v45, %v1659_v50  ;;  %v1708_v34 = vadd.f32 %v1682_v45, %v1660_v27  ;;  %v1953_v10 = vpack.c.bf16 %v1930_v42, %v1929_v12  ;;  %v1624_v12 = vperm.slane %v3597_v37, %v3135_v2 }
 0x23a   : > { %v3740_v60 = vpack.c.bf16 %v2231_v26, %v2229_v0  ;;  %v3742_v47 = vpack.c.bf16 %v2232_v57, %v2230_v55  ;;  %v1616_v26 = vperm.slane %v3624_v62, %v3135_v2  ;;  %v1640_v37 = vperm.slane %v3584_v19, %v3135_v2 }
 0x23b   : > { %v1730_v17 = vpack.c.bf16 %v1708_v34, %v1707_v48  ;;  %v2105_v49 = vunpack.c.l.bf16 %v1953_v10  ;;  %v2106_v5 = vunpack.c.h.bf16 %v1953_v10  ;;  %v1686_v28 = vunpack.c.l.bf16 %v1624_v12 }
 0x23c   : > { %v1433_v46 = vpop.f32.mrf.mxu2  ;;  %v1482_v13 = vpop.f32.mrf.mxu3  ;;  %v1685_v62 = vunpack.c.l.bf16 %v1616_v26 }
 0x23d   : > { %v1883_v21 = vunpack.c.l.bf16 %v1730_v17  ;;  %v1884_v35 = vunpack.c.h.bf16 %v1730_v17  ;;  %v2153_v7 = vadd.f32 %v2129_v29, %v2105_v49  ;;  %v2154_v54 = vadd.f32 %v2129_v29, %v2106_v5 }
 0x23e   : > { %v1608_v17 = vperm.slane %v3604_v58, %v3135_v2  ;;  %v1507_v10 = vpack.c.bf16 %v1482_v13, %v1433_v46  ;;  %v1856_v58 = vperm.slane %v3592_v59, %v3135_v2 }
 0x23f   : > { %v1931_v43 = vmul.f32 %v1906_v32, %v1883_v21  ;;  %v1932_v44 = vmul.f32 %v1906_v32, %v1884_v35  ;;  %v2233_v16 = vmax.f32 %v2153_v7, 0.0  ;;  %v2234_v14 = vmax.f32 %v2154_v54, 0.0 }
 0x240   : > { %v1632_v32 = vperm.slane %v3589_v51, %v3135_v2  ;;  %v1600_v35 = vperm.slane %v3615_v11, %v3135_v2  ;;  %v1684_v46 = vunpack.c.l.bf16 %v1608_v17  ;;  %v1840_v11 = vperm.slane %v3602_v18, %v3135_v2 }
 0x241   : > { %v1954_v31 = vpack.c.bf16 %v1932_v44, %v1931_v43 }
 0x242   : > { %v1683_v54 = vunpack.c.l.bf16 %v1600_v35  ;;  %v1909_v18 = vunpack.c.l.bf16 %v1840_v11 }
 0x243   : > { %v2107_v24 = vunpack.c.l.bf16 %v1954_v31  ;;  %v2108_v36 = vunpack.c.h.bf16 %v1954_v31  ;;  %v1661_v31 = vunpack.c.l.bf16 %v1507_v10 }
 0x244   : > { %v1435_v9 = vpop.f32.mrf.mxu2  ;;  %v1484_v61 = vpop.f32.mrf.mxu3 }
 0x245   : > { %v2155_v56 = vadd.f32 %v2130_v33, %v2107_v24  ;;  %v2156_v39 = vadd.f32 %v2130_v33, %v2108_v36  ;;  %v1508_v57 = vpack.c.bf16 %v1484_v61, %v1435_v9  ;;  %v1687_v33 = vunpack.c.l.bf16 %v1632_v32 }
 0x246   : > { %v1662_v24 = vunpack.c.h.bf16 %v1507_v10  ;;  %v1848_v9 = vperm.slane %v3613_v41, %v3135_v2  ;;  %v2080_v41 = vperm.slane %v3608_v23, %v3135_v2  ;;  %v1824_v23 = vperm.slane %v3619_v15, %v3135_v2 }
 0x247   : > { %v2235_v22 = vmax.f32 %v2155_v56, 0.0  ;;  %v2236_v20 = vmax.f32 %v2156_v39, 0.0  ;;  %v1663_v43 = vunpack.c.l.bf16 %v1508_v57  ;;  %v1664_v44 = vunpack.c.h.bf16 %v1508_v57 }
 0x248   : > { %v1910_v12 = vunpack.c.l.bf16 %v1848_v9  ;;  %v1907_v15 = vunpack.c.l.bf16 %v1824_v23 }
 0x249   : > { %v3748_v45 = vpack.c.bf16 %v2235_v22, %v2233_v16  ;;  %v3750_v6 = vpack.c.bf16 %v2236_v20, %v2234_v14  ;;  %v1711_v56 = vadd.f32 %v1684_v46, %v1663_v43  ;;  %v1712_v39 = vadd.f32 %v1684_v46, %v1664_v44 }
 0x24a   : > { %v1832_v14 = vperm.slane %v3617_v52, %v3135_v2  ;;  %v1709_v20 = vadd.f32 %v1683_v54, %v1661_v31  ;;  %v1864_v44 = vperm.slane %v3645_v63, %v3135_v2 }
 0x24c   : > { %v1438_v25 = vpop.f32.mrf.mxu2  ;;  %v1487_v50 = vpop.f32.mrf.mxu3  ;;  %v1908_v52 = vunpack.c.l.bf16 %v1832_v14 }
 0x24d   : > { %v1509_v42 = vpack.c.bf16 %v1487_v50, %v1438_v25  ;;  %v1710_v25 = vadd.f32 %v1683_v54, %v1662_v24 }
 0x24f   : > { %v1665_v8 = vunpack.c.l.bf16 %v1509_v42  ;;  %v1666_v21 = vunpack.c.h.bf16 %v1509_v42  ;;  %v1732_v42 = vpack.c.bf16 %v1712_v39, %v1711_v56  ;;  %v1731_v10 = vpack.c.bf16 %v1710_v25, %v1709_v20 }
 0x250   : > { %v1912_v56 = vunpack.c.l.bf16 %v1864_v44 }
 0x251   : > { %v1713_v36 = vadd.f32 %v1685_v62, %v1665_v8  ;;  %v1714_v19 = vadd.f32 %v1685_v62, %v1666_v21  ;;  %v1885_v46 = vunpack.c.l.bf16 %v1731_v10 }
 0x253   : > { %v1733_v50 = vpack.c.bf16 %v1714_v19, %v1713_v36  ;;  %v2135_v36 = vunpack.c.l.bf16 %v2080_v41  ;;  %v2072_v19 = vperm.slane %v3626_v30, %v3135_v2  ;;  %v1933_v25 = vmul.f32 %v1907_v15, %v1885_v46  ;;  %v3954_v41 = vld [vmem:[#allocation17_spill] sm:$0xff] }
 0x254   : > { %v1440_v27 = vpop.f32.mrf.mxu2  ;;  %v1489_v0 = vpop.f32.mrf.mxu3 }
 0x255   : > { %v1510_v55 = vpack.c.bf16 %v1489_v0, %v1440_v27  ;;  %v1688_v27 = vunpack.c.l.bf16 %v1640_v37  ;;  %v1911_v0 = vunpack.c.l.bf16 %v1856_v58  ;;  %v1889_v8 = vunpack.c.l.bf16 %v1733_v50 }
 0x256   : > { %v1890_v21 = vunpack.c.h.bf16 %v1733_v50 }
 0x257   : > { %v1667_v48 = vunpack.c.l.bf16 %v1510_v55  ;;  %v1668_v34 = vunpack.c.h.bf16 %v1510_v55  ;;  %v1937_v31 = vmul.f32 %v1909_v18, %v1889_v8 }
 0x258   : > { %v1938_v24 = vmul.f32 %v1909_v18, %v1890_v21 }
 0x259   : > { %v1715_v29 = vadd.f32 %v1686_v28, %v1667_v48  ;;  %v1716_v49 = vadd.f32 %v1686_v28, %v1668_v34 }
 0x25a   : > { %v1957_v20 = vpack.c.bf16 %v1938_v24, %v1937_v31 }
 0x25b   : > { %v1734_v16 = vpack.c.bf16 %v1716_v49, %v1715_v29  ;;  %v1887_v29 = vunpack.c.l.bf16 %v1732_v42  ;;  %v1888_v49 = vunpack.c.h.bf16 %v1732_v42  ;;  %v3955_v42 = vld [vmem:[#allocation18_spill] sm:$0xff] }
 0x25c   : > { %v1443_v5 = vpop.f32.mrf.mxu2  ;;  %v1492_v51 = vpop.f32.mrf.mxu3 }
 0x25d   : > { %v1511_v13 = vpack.c.bf16 %v1492_v51, %v1443_v5  ;;  %v1891_v26 = vunpack.c.l.bf16 %v1734_v16  ;;  %v1892_v34 = vunpack.c.h.bf16 %v1734_v16  ;;  %v1936_v54 = vmul.f32 %v1908_v52, %v1888_v49 }
 0x25f   : > { %v1669_v61 = vunpack.c.l.bf16 %v1511_v13  ;;  %v1670_v7 = vunpack.c.h.bf16 %v1511_v13  ;;  %v1939_v58 = vmul.f32 %v1910_v12, %v1891_v26  ;;  %v1886_v13 = vunpack.c.h.bf16 %v1731_v10 }
 0x260   : > { %v2056_v26 = vperm.slane %v3955_v42, %v3135_v2  ;;  %v2114_v10 = vunpack.c.h.bf16 %v1957_v20  ;;  %v2687_v42 = vld [vmem:[%s2925_s26 + $0x8] sm:$0xff] }
 0x261   : > { %v1717_v59 = vadd.f32 %v1687_v33, %v1669_v61  ;;  %v1718_v22 = vadd.f32 %v1687_v33, %v1670_v7  ;;  %v1940_v33 = vmul.f32 %v1910_v12, %v1892_v34  ;;  %v3952_v61 = vld [vmem:[#allocation19_spill] sm:$0xff]  ;;  %v1935_v7 = vmul.f32 %v1908_v52, %v1887_v29 }
 0x262   : > { %v2064_v63 = vperm.slane %v3952_v61, %v3135_v2  ;;  %v1934_v50 = vmul.f32 %v1907_v15, %v1886_v13  ;;  %v2048_v12 = vperm.slane %v3954_v41, %v3135_v2  ;;  %v2113_v52 = vunpack.c.l.bf16 %v1957_v20 }
 0x263   : > { %v1735_v55 = vpack.c.bf16 %v1718_v22, %v1717_v59  ;;  %v1958_v59 = vpack.c.bf16 %v1940_v33, %v1939_v58  ;;  %v3953_v22 = vld [vmem:[#allocation20_spill] sm:$0xff]  ;;  %v2132_v23 = vunpack.c.l.bf16 %v2056_v26 }
 0x264   : > { %v1445_v57 = vpop.f32.mrf.mxu2  ;;  %v1494_v48 = vpop.f32.mrf.mxu3  ;;  %v2088_v14 = vperm.slane %v3953_v22, %v3135_v2  ;;  %v1955_v8 = vpack.c.bf16 %v1934_v50, %v1933_v25 }
 0x265   : > { %v1893_v32 = vunpack.c.l.bf16 %v1735_v55  ;;  %v1894_v17 = vunpack.c.h.bf16 %v1735_v55  ;;  %v1512_v28 = vpack.c.bf16 %v1494_v48, %v1445_v57  ;;  %v2134_v55 = vunpack.c.l.bf16 %v2072_v19 }
 0x266   : > { %v1956_v57 = vpack.c.bf16 %v1936_v54, %v1935_v7  ;;  %v2133_v48 = vunpack.c.l.bf16 %v2064_v63  ;;  %v2109_v46 = vunpack.c.l.bf16 %v1955_v8  ;;  %v2110_v13 = vunpack.c.h.bf16 %v1955_v8  ;;  %v2689_v8 = vld [vmem:[%s2925_s26 + $0x18] sm:$0xff] }
 0x267   : > { %v1671_v37 = vunpack.c.l.bf16 %v1512_v28  ;;  %v1672_v35 = vunpack.c.h.bf16 %v1512_v28  ;;  %v1941_v62 = vmul.f32 %v1911_v0, %v1893_v32  ;;  %v1942_v43 = vmul.f32 %v1911_v0, %v1894_v17 }
 0x268   : > { %v2115_v32 = vunpack.c.l.bf16 %v1958_v59  ;;  %v2116_v17 = vunpack.c.h.bf16 %v1958_v59  ;;  %v2136_v28 = vunpack.c.l.bf16 %v2088_v14  ;;  %v2111_v44 = vunpack.c.l.bf16 %v1956_v57 }
 0x269   : > { %v1719_v5 = vadd.f32 %v1688_v27, %v1671_v37  ;;  %v1720_v51 = vadd.f32 %v1688_v27, %v1672_v35  ;;  %v1959_v9 = vpack.c.bf16 %v1942_v43, %v1941_v62  ;;  %v2131_v43 = vunpack.c.l.bf16 %v2048_v12  ;;  %v2686_v12 = vld [vmem:[%s2925_s26] sm:$0xff] }
 0x26a   : > { %v2112_v29 = vunpack.c.h.bf16 %v1956_v57  ;;  %v2163_v2 = vadd.f32 %v2134_v55, %v2115_v32  ;;  %v2161_v58 = vadd.f32 %v2133_v48, %v2113_v52  ;;  %v2162_v33 = vadd.f32 %v2133_v48, %v2114_v10  ;;  %v2688_v52 = vld [vmem:[%s2925_s26 + $0x10] sm:$0xff] }
 0x26b   : > { %v1736_v11 = vpack.c.bf16 %v1720_v51, %v1719_v5  ;;  %v2117_v0 = vunpack.c.l.bf16 %v1959_v9  ;;  %v2118_v18 = vunpack.c.h.bf16 %v1959_v9  ;;  %v2164_v51 = vadd.f32 %v2134_v55, %v2116_v17  ;;  %v2683_v55 = vld [vmem:[%s3873_s4 + $0x8] sm:$0xff] }
 0x26c   : > { %v2159_v9 = vadd.f32 %v2132_v23, %v2111_v44  ;;  %v2160_v15 = vadd.f32 %v2132_v23, %v2112_v29  ;;  %v2243_v63 = vmax.f32 %v2163_v2, 0.0  ;;  %v2241_v54 = vmax.f32 %v2161_v58, 0.0  ;;  %v2691_v2 = vld [vmem:[%s2925_s26 + $0x28] sm:$0xff] }
 0x26d   : > { %v1895_v39 = vunpack.c.l.bf16 %v1736_v11  ;;  %v1896_v16 = vunpack.c.h.bf16 %v1736_v11  ;;  %v2165_v37 = vadd.f32 %v2135_v36, %v2117_v0  ;;  %v2166_v62 = vadd.f32 %v2135_v36, %v2118_v18  ;;  %v2682_v18 = vld [vmem:[%s3873_s4] sm:$0xff] }
 0x26e   : > { %v2244_v7 = vmax.f32 %v2164_v51, 0.0  ;;  %v2261_v59 = vpack.c.bf16 %v2243_v63, %v2241_v54  ;;  %v2239_v14 = vmax.f32 %v2159_v9, 0.0  ;;  %v2240_v20 = vmax.f32 %v2160_v15, 0.0  ;;  %v2693_v15 = vld [vmem:[%s2925_s26 + $0x38] sm:$0xff] }
 0x26f   : > { %v1943_v27 = vmul.f32 %v1912_v56, %v1895_v39  ;;  %v1944_v30 = vmul.f32 %v1912_v56, %v1896_v16  ;;  %v2245_v31 = vmax.f32 %v2165_v37, 0.0  ;;  %v2246_v19 = vmax.f32 %v2166_v62, 0.0 }
 0x270   : > { %v2242_v56 = vmax.f32 %v2162_v33, 0.0  ;;  %v2157_v39 = vadd.f32 %v2131_v43, %v2109_v46  ;;  %v2158_v16 = vadd.f32 %v2131_v43, %v2110_v13  ;;  %v2802_v0 = vmov 6  }
 0x271   : > { %v1960_v34 = vpack.c.bf16 %v1944_v30, %v1943_v27  ;;  %2679 = vset.pattern.permute.xlu1 %v2802_v0  ;;  %2680 = vset.pattern.permute.xlu2 %v2802_v0 }
 0x272   : > { %v2262_v22 = vpack.c.bf16 %v2244_v7, %v2242_v56  ;;  %v2237_v25 = vmax.f32 %v2157_v39, 0.0  ;;  %v2238_v50 = vmax.f32 %v2158_v16, 0.0  ;;  %2271 = vperm.xlu1 %2679, %v2682_v18   ;;  %2276 = vperm.xlu2 %2680, %v2683_v55  }
 0x273   : > { %v2119_v21 = vunpack.c.l.bf16 %v1960_v34  ;;  %v2120_v35 = vunpack.c.h.bf16 %v1960_v34  ;;  %2681 = vset.pattern.permute.xlu0 %v2802_v0 }
 0x274   : > { %v2259_v27 = vpack.c.bf16 %v2239_v14, %v2237_v25  ;;  %v2260_v30 = vpack.c.bf16 %v2240_v20, %v2238_v50 }
 0x275   : > { %v2167_v49 = vadd.f32 %v2136_v28, %v2119_v21  ;;  %v2168_v5 = vadd.f32 %v2136_v28, %v2120_v35 }
 0x277   : > { %v2247_v24 = vmax.f32 %v2167_v49, 0.0  ;;  %v2248_v11 = vmax.f32 %v2168_v5, 0.0  ;;  %v2690_v49 = vld [vmem:[%s2925_s26 + $0x20] sm:$0xff] }
 0x279   : > { %v2263_v61 = vpack.c.bf16 %v2247_v24, %v2245_v31  ;;  %v2264_v36 = vpack.c.bf16 %v2248_v11, %v2246_v19  ;;  %v2692_v11 = vld [vmem:[%s2925_s26 + $0x30] sm:$0xff]  ;;  %s2744_s26 = scalar_lea.hbm %s3874_s5, 256 }
 0x27a   : > { %p2746_p2 = scmp.lt.s32.totalorder %s2744_s26, %s2740_s8 }
 0x27b   : > { %2301 = vmatpush.bf16.msrb.mxu0 %v2263_v61  ;;  %2320 = vmatpush.bf16.msrb.mxu1 %v2264_v36 }
 0x27c   : > { %p2747_p3 = por %p2746_p2, %p2745_p1 }
 0x27e   : > { %p2748_p4 = pnand %p2747_p3, %p2743_p13 }
 0x27f   : > { %2302 = vmatpush.bf16.msrb.mxu0 %v2261_v59  ;;  %2321 = vmatpush.bf16.msrb.mxu1 %v2262_v22 }
 0x283   : > { %2303 = vmatpush.bf16.msrb.mxu0 %v2259_v27  ;;  %2322 = vmatpush.bf16.msrb.mxu1 %v2260_v30 }
 0x287   : > { %2304 = vmatpush.bf16.msrb.mxu0 %v3748_v45  ;;  %2323 = vmatpush.bf16.msrb.mxu1 %v3750_v6 }
 0x28b   : > { %2305 = vmatpush.bf16.msrb.mxu0 %v3740_v60  ;;  %2324 = vmatpush.bf16.msrb.mxu1 %v3742_v47  ;;  %v2684_v60 = vld [vmem:[%s3873_s4 + $0x10] sm:$0xff]  ;;  %v2685_v47 = vld [vmem:[%s3873_s4 + $0x18] sm:$0xff] }
 0x28c   : > { %2281 = vperm.xlu1 %2679, %v2684_v60   ;;  %2286 = vperm.xlu2 %2680, %v2685_v47  }
 0x28f   : > { %2306 = vmatpush.bf16.msrb.mxu0 %v3728_v38  ;;  %2325 = vmatpush.bf16.msrb.mxu1 %v3730_v3  ;;  %v2571_v38 = vld [vmem:[%s3872_s3] sm:$0xff] }
 0x293   : > { %2307 = vmatpush.bf16.msrb.mxu0 %v3708_v40  ;;  %2326 = vmatpush.bf16.msrb.mxu1 %v3710_v4  ;;  %v2572_v40 = vld [vmem:[%s3872_s3 + $0x8] sm:$0xff] }
 0x297   : > { %2308 = vmatpush.bf16.msrb.mxu0 %v3693_v53  ;;  %2327 = vmatpush.bf16.msrb.mxu1 %v3695_v1 }
 0x29a   : > { %2309 = vmatmul.bf16.vlgmr.msrb.gmra.mxu0 %v2571_v38  ;;  %2328 = vmatmul.bf16.vlgmr.msrb.gmra.mxu1 %v2571_v38 }
 0x2aa   : > { %2314 = vmatmul.bf16.gmra.mxu0 %v2572_v40  ;;  %2333 = vmatmul.bf16.gmra.mxu1 %v2572_v40 }
 0x2cc   : > { %v2277_v48 = vpop.permute.xlu2 %2276 }
 0x2e4   : > { %v2272_v4 = vpop.permute.xlu1 %2271 }
 0x2e6   : > { %v2287_v46 = vpop.permute.xlu2 %2286 }
 0x2fe   : > { %v2282_v62 = vpop.permute.xlu1 %2281 }
 0x317   : > { %v2310_v3 = vpop.f32.mrf.mxu0  ;;  %v2329_v45 = vpop.f32.mrf.mxu1 }
 0x318   : > { %v2311_v6 = vadd.f32 %v2310_v3, %v2272_v4  ;;  %v2330_v41 = vadd.f32 %v2329_v45, %v2272_v4 }
 0x31a   : > { %v2339_v53 = vadd.f32 %v2686_v12, %v2311_v6  ;;  %v2340_v1 = vadd.f32 %v2687_v42, %v2330_v41 }
 0x31c   : > { %v2347_v26 = vmax.f32 %v2339_v53, 0.0  ;;  %v2348_v57 = vmax.f32 %v2340_v1, 0.0 }
 0x31e   : > { %2355 = vst [vmem:[%s3820_s12] sm:$0xff] %v2347_v26 }
 0x31f   : > { %2356 = vst [vmem:[%s3820_s12 + $0x8] sm:$0xff] %v2348_v57  ;;  %v2312_v34 = vpop.f32.mrf.mxu0  ;;  %v2331_v32 = vpop.f32.mrf.mxu1 }
 0x320   : > { %v2313_v17 = vadd.f32 %v2312_v34, %v2277_v48  ;;  %v2332_v28 = vadd.f32 %v2331_v32, %v2277_v48 }
 0x322   : > { %v2341_v10 = vadd.f32 %v2688_v52, %v2313_v17  ;;  %v2342_v21 = vadd.f32 %v2689_v8, %v2332_v28 }
 0x324   : > { %v2349_v37 = vmax.f32 %v2341_v10, 0.0  ;;  %v2350_v35 = vmax.f32 %v2342_v21, 0.0 }
 0x326   : > { %2357 = vst [vmem:[%s3820_s12 + $0x10] sm:$0xff] %v2349_v37 }
 0x327   : > { %2358 = vst [vmem:[%s3820_s12 + $0x18] sm:$0xff] %v2350_v35  ;;  %v2315_v43 = vpop.f32.mrf.mxu0  ;;  %v2334_v23 = vpop.f32.mrf.mxu1 }
 0x328   : > { %v2316_v44 = vadd.f32 %v2315_v43, %v2282_v62  ;;  %v2335_v29 = vadd.f32 %v2334_v23, %v2282_v62 }
 0x32a   : > { %v2343_v5 = vadd.f32 %v2690_v49, %v2316_v44  ;;  %v2344_v51 = vadd.f32 %v2691_v2, %v2335_v29 }
 0x32c   : > { %v2351_v58 = vmax.f32 %v2343_v5, 0.0  ;;  %v2352_v33 = vmax.f32 %v2344_v51, 0.0 }
 0x32e   : > { %2359 = vst [vmem:[%s3820_s12 + $0x20] sm:$0xff] %v2351_v58 }
 0x32f   : > { %2360 = vst [vmem:[%s3820_s12 + $0x28] sm:$0xff] %v2352_v33  ;;  %v2317_v13 = vpop.f32.mrf.mxu0  ;;  %v2336_v31 = vpop.f32.mrf.mxu1 }
 0x330   : > { %v2318_v24 = vadd.f32 %v2317_v13, %v2287_v46  ;;  %v2337_v19 = vadd.f32 %v2336_v31, %v2287_v46 }
 0x332   : > { %v2345_v9 = vadd.f32 %v2692_v11, %v2318_v24  ;;  %v2346_v61 = vadd.f32 %v2693_v15, %v2337_v19 }
 0x334   : > { %v2353_v36 = vmax.f32 %v2345_v9, 0.0  ;;  %v2354_v63 = vmax.f32 %v2346_v61, 0.0 }
 0x336   : > { %2361 = vst [vmem:[%s3820_s12 + $0x30] sm:$0xff] %v2353_v36 }
 0x337   : > { %2362 = vst [vmem:[%s3820_s12 + $0x38] sm:$0xff] %v2354_v63 }
 0x338   : > { %2751 = shalt.err (!%p2748_p4)
}
 0x339   : > { %s2803_s14 = smov 256   ;;  %s2804_s11 = smov 1024  }
 0x33a   : > { %s2805_s12 = smov 16  }
 0x33b   : > { %2576 = dma.vmem_to_hbm [thread:$0]  (%p2885_p10), %s2377_s16, 1024, %s2379_s22, %s2364_s29, %s2803_s14, %s2804_s11, %s2805_s12  }
 0x33c PF: > { %p2587_p5 = scmp.ge.s32.totalorder %s2790_s21, 2  ;;  %s2393_s23 = sand.u32 1, %s2778_s18  }
 0x33d   : > { %s2394_s25 = scalar_lea.sflag [#allocation4], %s2393_s23 }
 0x33e   : > { %p2583_p7 = pnand %p2587_p5, %p2889_p11 }
 0x340   : > { %p2584_p8 = pneg %p2583_p7 }
 0x342   : > { %2773 = dma.done.wait (%p2584_p8), %s2394_s25, 1024  }
 0x343   : > { %2775 = vsyncadd (%p2584_p8), %s2394_s25, 4294966272  ;;  %p18_p9 = scmp.ge.s32.totalorder %s2861_s24, 6   ;;  %s3956_s18 = smov %s2782_s19 }
 0x344   : > { %s3957_s19 = smov %s2786_s20  ;;  %s3958_s20 = smov %s2873_s27 }
 0x345   : > { %s3959_s21 = smov %s2861_s24  ;;  %20 = sbr.rel (!%p18_p9) target bundleno = 5 (0x5), region = 85 }
 0x34a   :  { %2400 = vsyncpa [#allocation3], 1 }
 0x34b   :  { %2402 = vsyncpa [#allocation3 + $0x1], 1 }
 0x34c   :  { %2403 = vsyncpa [#allocation4], 1 }
 0x34d   :  { %2405 = vsyncpa [#allocation4 + $0x1], 1 }

</bundles_post_ra>
